<compile_context>
chip_gen: v6e
topology: v6e:2x2x1
jax: 0.10.0
libtpu: 0.0.40
codegen_flags: <defaults>
</compile_context>

<pallas_src>
import jax
import jax.numpy as jnp
from jax import lax
from jax.experimental import pallas as pl
from jax.experimental.pallas import tpu as pltpu


def bilstm_linear_kernel(
    x_ref,        # (T, Bt, E)   f32 embeddings, time-major (this batch tile)
    wih_f_ref,    # (E, 4Hp)     bf16 forward input weights (gate order i,f,g,o)
    whh_f_ref,    # (Hp, 4Hp)    f32  forward hidden weights
    b_f_ref,      # (1, 4Hp)     f32  forward bias (b_ih + b_hh)
    wih_b_ref,    # (E, 4Hp)     bf16 backward input weights
    whh_b_ref,    # (Hp, 4Hp)    f32  backward hidden weights
    b_b_ref,      # (1, 4Hp)     f32  backward bias
    wlin_ref,     # (2Hp, NTp)   bf16 linear weight (pre-transposed, padded)
    blin_ref,     # (1, NTp)     f32  linear bias
    pred_ref,     # (T, Bt, NTp) f32  output: tag logits
    hid_ref,      # (T, Bt, 2Hp) f32  output: lstm hidden states
    xg_f_ref,     # (T, Bt, 4Hp) f32  VMEM scratch: precomputed fwd gate inputs
    xg_b_ref,     # (T, Bt, 4Hp) f32  VMEM scratch: precomputed bwd gate inputs
):
    T, Bt, E = x_ref.shape
    Hp4 = wih_f_ref.shape[1]
    Hp = Hp4 // 4
    NTp = wlin_ref.shape[1]

    # ---- Hoisted input projections: one big MXU matmul per direction, bias
    # fused here so it is not re-broadcast every timestep inside the loop.
    x_flat = x_ref[...].reshape(T * Bt, E).astype(jnp.bfloat16)
    xg_f_ref[...] = (
        jnp.dot(x_flat, wih_f_ref[...], preferred_element_type=jnp.float32)
        + b_f_ref[...]
    ).reshape(T, Bt, Hp4)
    xg_b_ref[...] = (
        jnp.dot(x_flat, wih_b_ref[...], preferred_element_type=jnp.float32)
        + b_b_ref[...]
    ).reshape(T, Bt, Hp4)

    # Hoist recurrent weights out of the loop.
    whh_f = whh_f_ref[...]
    whh_b = whh_b_ref[...]

    def lstm_cell(pre, h, c, whh):
        # pre already contains x @ W_ih + (b_ih + b_hh); only the recurrent
        # matmul is on the serial critical path (kept in f32).
        gates = pre + jnp.dot(h, whh, preferred_element_type=jnp.float32)
        i_g = jax.nn.sigmoid(gates[:, 0 * Hp:1 * Hp])
        f_g = jax.nn.sigmoid(gates[:, 1 * Hp:2 * Hp])
        g_g = jnp.tanh(gates[:, 2 * Hp:3 * Hp])
        o_g = jax.nn.sigmoid(gates[:, 3 * Hp:4 * Hp])
        c_new = f_g * c + i_g * g_g
        h_new = o_g * jnp.tanh(c_new)
        return h_new, c_new

    def step(i, carry):
        hf, cf, hb, cb = carry
        tb = T - 1 - i
        # The two directions are independent; issuing both recurrent matmuls
        # per iteration lets the second hide the first's MXU fill/drain.
        hf, cf = lstm_cell(xg_f_ref[i], hf, cf, whh_f)
        hb, cb = lstm_cell(xg_b_ref[tb], hb, cb, whh_b)
        # Write straight into the concatenated output layout.
        hid_ref[i, :, 0:Hp] = hf
        hid_ref[tb, :, Hp:2 * Hp] = hb
        return hf, cf, hb, cb

    z = jnp.zeros((Bt, Hp), jnp.float32)
    unroll = True if T <= 32 else 4
    lax.fori_loop(0, T, step, (z, z, z, z), unroll=unroll)

    # ---- Output projection: one lane-dense matmul over all timesteps.
    hid = hid_ref[...]                                        # (T, Bt, 2Hp) f32
    logits = jnp.dot(
        hid.reshape(T * Bt, 2 * Hp).astype(jnp.bfloat16),
        wlin_ref[...],
        preferred_element_type=jnp.float32,
    ).reshape(T, Bt, NTp)
    pred_ref[...] = logits + blin_ref[...]


def _round_up(x, m):
    return (x + m - 1) // m * m


def _pad_gate_cols(w, H, Hp):
    """(..., 4H) -> (..., 4Hp): gate k moved to columns [k*Hp, k*Hp+H), zeros
    elsewhere. Zero padding keeps padded hidden units exactly 0 for all t."""
    out = jnp.zeros(w.shape[:-1] + (4 * Hp,), w.dtype)
    for k in range(4):
        out = out.at[..., k * Hp:k * Hp + H].set(w[..., k * H:(k + 1) * H])
    return out


def bilstm_tagger_forward(X, params):
    """X: (B, T) int32 token ids -> (prediction (B,T,NT), lstm_hidden (B,T,2H))."""
    emb_table = params["embedding"]              # (V, E), row 0 zeroed (padding_idx=0)
    emb = emb_table[X]                           # (B, T, E) gather — glue in plain JAX
    # TODO(synk): embedding gather could be fused into the kernel via
    # PrefetchScalarGridSpec + pl.Element row-gather on the token ids.
    # F.dropout with training=False -> identity (eval-mode forward).
    x_tm = jnp.transpose(emb, (1, 0, 2)).astype(jnp.float32)   # (T, B, E)

    T, B, E = x_tm.shape
    H = params["whh_f"].shape[0]
    NT = params["wlin"].shape[1]

    # Padded, lane/sublane-dense sizes.
    Bp = _round_up(B, 8)
    Hp = _round_up(H, 64)          # 2*Hp is a multiple of 128 lanes
    NTp = _round_up(NT, 128)
    Bt = Bp if Bp <= 256 else 256  # batch tile per grid step
    Bp = _round_up(Bp, Bt)
    n_btiles = Bp // Bt

    # --- pad / re-layout parameters (glue; in production do this once). ---
    def pad_dir(wih, whh, b):
        wih_p = _pad_gate_cols(wih, H, Hp).astype(jnp.bfloat16)        # (E, 4Hp)
        whh_p = jnp.zeros((Hp, 4 * Hp), jnp.float32)
        whh_p = whh_p.at[:H, :].set(_pad_gate_cols(whh, H, Hp))        # (Hp, 4Hp)
        b_p = _pad_gate_cols(b, H, Hp).astype(jnp.float32)             # (1, 4Hp)
        return wih_p, whh_p, b_p

    wih_f_p, whh_f_p, b_f_p = pad_dir(params["wih_f"], params["whh_f"], params["b_f"])
    wih_b_p, whh_b_p, b_b_p = pad_dir(params["wih_b"], params["whh_b"], params["b_b"])

    wlin = params["wlin"]                                              # (2H, NT)
    wlin_p = jnp.zeros((2 * Hp, NTp), jnp.float32)
    wlin_p = wlin_p.at[0:H, :NT].set(wlin[0:H])                        # forward rows
    wlin_p = wlin_p.at[Hp:Hp + H, :NT].set(wlin[H:2 * H])              # backward rows
    wlin_p = wlin_p.astype(jnp.bfloat16)
    blin_p = jnp.zeros((1, NTp), jnp.float32).at[:, :NT].set(params["blin"])

    x_p = jnp.zeros((T, Bp, E), jnp.float32).at[:, :B, :].set(x_tm)

    const2 = lambda b: (0, 0)
    pred_tm, hid_tm = pl.pallas_call(
        bilstm_linear_kernel,
        out_shape=(
            jax.ShapeDtypeStruct((T, Bp, NTp), jnp.float32),
            jax.ShapeDtypeStruct((T, Bp, 2 * Hp), jnp.float32),
        ),
        grid=(n_btiles,),
        in_specs=[
            pl.BlockSpec((T, Bt, E), lambda b: (0, b, 0)),
            pl.BlockSpec((E, 4 * Hp), const2),
            pl.BlockSpec((Hp, 4 * Hp), const2),
            pl.BlockSpec((1, 4 * Hp), const2),
            pl.BlockSpec((E, 4 * Hp), const2),
            pl.BlockSpec((Hp, 4 * Hp), const2),
            pl.BlockSpec((1, 4 * Hp), const2),
            pl.BlockSpec((2 * Hp, NTp), const2),
            pl.BlockSpec((1, NTp), const2),
        ],
        out_specs=(
            pl.BlockSpec((T, Bt, NTp), lambda b: (0, b, 0)),
            pl.BlockSpec((T, Bt, 2 * Hp), lambda b: (0, b, 0)),
        ),
        scratch_shapes=[
            pltpu.VMEM((T, Bt, 4 * Hp), jnp.float32),
            pltpu.VMEM((T, Bt, 4 * Hp), jnp.float32),
        ],
        compiler_params=pltpu.CompilerParams(
            dimension_semantics=("parallel",),
        ),
    )(
        x_p,
        wih_f_p, whh_f_p, b_f_p,
        wih_b_p, whh_b_p, b_b_p,
        wlin_p, blin_p,
    )

    # Un-pad + back to batch-first (single fused slice+transpose per output).
    prediction = jnp.transpose(pred_tm[:, :B, :NT], (1, 0, 2))          # (B, T, NT)
    hid_f = hid_tm[:, :B, 0:H]
    hid_b = hid_tm[:, :B, Hp:Hp + H]
    lstm_hidden = jnp.transpose(
        jnp.concatenate([hid_f, hid_b], axis=-1), (1, 0, 2))            # (B, T, 2H)
    return prediction, lstm_hidden


def init_params(key, vocab_size, emb_dim, hidden_dim, num_tag):
    """Deterministic synthetic parameters matching the module's shapes.
    nn.LSTM stores weight_ih (4H, E) / weight_hh (4H, H) with gate order
    i,f,g,o; we pre-transpose to (E, 4H)/(H, 4H) and fuse b_ih + b_hh.
    TODO(synk): n_layer > 1 stacked LSTM (with inter-layer dropout) not modeled;
    this implements the n_layer=1 case. CRF params exist on the module but are
    unused by forward()."""
    ks = jax.random.split(key, 12)
    s = 0.1
    emb = s * jax.random.normal(ks[0], (vocab_size, emb_dim), jnp.float32)
    emb = emb.at[0].set(0.0)  # padding_idx=0

    def lstm_dir(k):
        k1, k2, k3, k4 = jax.random.split(k, 4)
        wih = s * jax.random.normal(k1, (emb_dim, 4 * hidden_dim), jnp.float32)
        whh = s * jax.random.normal(k2, (hidden_dim, 4 * hidden_dim), jnp.float32)
        b = (s * jax.random.normal(k3, (1, 4 * hidden_dim), jnp.float32)
             + s * jax.random.normal(k4, (1, 4 * hidden_dim), jnp.float32))
        return wih, whh, b

    wih_f, whh_f, b_f = lstm_dir(ks[1])
    wih_b, whh_b, b_b = lstm_dir(ks[2])
    wlin = s * jax.random.normal(ks[3], (2 * hidden_dim, num_tag), jnp.float32)
    blin = s * jax.random.normal(ks[4], (1, num_tag), jnp.float32)
    return {
        "embedding": emb,
        "wih_f": wih_f, "whh_f": whh_f, "b_f": b_f,
        "wih_b": wih_b, "whh_b": whh_b, "b_b": b_b,
        "wlin": wlin, "blin": blin,
    }


if __name__ == "__main__":
    # Small shapes consistent with the module's forward: X: (bsz, seq_len) ids.
    B, T = 2, 8
    VOCAB, EMB, HID, NTAG = 50, 16, 32, 8

    key = jax.random.PRNGKey(0)
    k_param, k_x = jax.random.split(key)
    params = init_params(k_param, VOCAB, EMB, HID, NTAG)
    X = jax.random.randint(k_x, (B, T), 0, VOCAB, dtype=jnp.int32)

    forward = jax.jit(bilstm_tagger_forward)
    prediction, lstm_hidden = forward(X, params)
    prediction = jax.block_until_ready(prediction)
    lstm_hidden = jax.block_until_ready(lstm_hidden)

    assert prediction.shape == (B, T, NTAG)
    assert lstm_hidden.shape == (B, T, 2 * HID)
    assert prediction.dtype == jnp.float32
    assert bool(jnp.all(jnp.isfinite(prediction)))
    assert bool(jnp.all(jnp.isfinite(lstm_hidden)))
    print("KERNEL_OK")
</pallas_src>

<mosaic_0001>
module attributes {stable_mosaic.version = 11 : i64} {
  func.func @bilstm_linear_kernel(%arg0: i32, %arg1: memref<8x8x16xf32, #tpu.memory_space<vmem>>, %arg2: memref<16x256xbf16, #tpu.memory_space<vmem>>, %arg3: memref<64x256xf32, #tpu.memory_space<vmem>>, %arg4: memref<1x256xf32, #tpu.memory_space<vmem>>, %arg5: memref<16x256xbf16, #tpu.memory_space<vmem>>, %arg6: memref<64x256xf32, #tpu.memory_space<vmem>>, %arg7: memref<1x256xf32, #tpu.memory_space<vmem>>, %arg8: memref<128x128xbf16, #tpu.memory_space<vmem>>, %arg9: memref<1x128xf32, #tpu.memory_space<vmem>>, %arg10: memref<8x8x128xf32, #tpu.memory_space<vmem>>, %arg11: memref<8x8x128xf32, #tpu.memory_space<vmem>>, %arg12: memref<8x8x256xf32, #tpu.memory_space<vmem>>, %arg13: memref<8x8x256xf32, #tpu.memory_space<vmem>>) attributes {dimension_semantics = [#tpu.dimension_semantics<parallel>], iteration_bounds = array<i64: 1>, scalar_prefetch = 0 : i64, scratch_operands = 2 : i64, tpu.core_type = #tpu.core_type<tc>, window_params = [{transform_indices = @transform_0, window_bounds = array<i64: 8, 8, 16>}, {pipeline_mode = #tpu.pipeline_mode<synchronous>, transform_indices = @transform_1, window_bounds = array<i64: 16, 256>}, {pipeline_mode = #tpu.pipeline_mode<synchronous>, transform_indices = @transform_2, window_bounds = array<i64: 64, 256>}, {pipeline_mode = #tpu.pipeline_mode<synchronous>, transform_indices = @transform_3, window_bounds = array<i64: 1, 256>}, {pipeline_mode = #tpu.pipeline_mode<synchronous>, transform_indices = @transform_4, window_bounds = array<i64: 16, 256>}, {pipeline_mode = #tpu.pipeline_mode<synchronous>, transform_indices = @transform_5, window_bounds = array<i64: 64, 256>}, {pipeline_mode = #tpu.pipeline_mode<synchronous>, transform_indices = @transform_6, window_bounds = array<i64: 1, 256>}, {pipeline_mode = #tpu.pipeline_mode<synchronous>, transform_indices = @transform_7, window_bounds = array<i64: 128, 128>}, {pipeline_mode = #tpu.pipeline_mode<synchronous>, transform_indices = @transform_8, window_bounds = array<i64: 1, 128>}, {transform_indices = @transform_9, window_bounds = array<i64: 8, 8, 128>}, {transform_indices = @transform_10, window_bounds = array<i64: 8, 8, 128>}]} {
    %c0 = arith.constant 0 : index
    %c0_0 = arith.constant 0 : index
    %c0_1 = arith.constant 0 : index
    %0 = vector.load %arg1[%c0, %c0_0, %c0_1] : memref<8x8x16xf32, #tpu.memory_space<vmem>>, vector<8x8x16xf32>
    %1 = vector.shape_cast %0 : vector<8x8x16xf32> to vector<64x16xf32>
    %2 = arith.truncf %1 : vector<64x16xf32> to vector<64x16xbf16>
    %c0_2 = arith.constant 0 : index
    %c0_3 = arith.constant 0 : index
    %3 = vector.load %arg2[%c0_2, %c0_3] : memref<16x256xbf16, #tpu.memory_space<vmem>>, vector<16x256xbf16>
    %cst = arith.constant dense<0.000000e+00> : vector<64x256xf32>
    %4 = tpu.matmul %2, %3, %cst {dimension_numbers = #tpu.dot_dimension_numbers<[1], [0], [0], [1], [0, 0, 1, 1], [], []>} : vector<64x16xbf16>, vector<16x256xbf16>, vector<64x256xf32> -> vector<64x256xf32>
    %c0_4 = arith.constant 0 : index
    %c0_5 = arith.constant 0 : index
    %5 = vector.load %arg4[%c0_4, %c0_5] : memref<1x256xf32, #tpu.memory_space<vmem>>, vector<1x256xf32>
    %6 = vector.broadcast %5 : vector<1x256xf32> to vector<64x256xf32>
    %7 = arith.addf %4, %6 : vector<64x256xf32>
    %8 = vector.shape_cast %7 : vector<64x256xf32> to vector<8x8x256xf32>
    %c0_6 = arith.constant 0 : index
    %c0_7 = arith.constant 0 : index
    %c0_8 = arith.constant 0 : index
    %9 = vector.load %arg12[%c0_6, %c0_7, %c0_8] : memref<8x8x256xf32, #tpu.memory_space<vmem>>, vector<8x8x256xf32>
    tpu.vector_store %arg12[%c0_6, %c0_7, %c0_8], %8 {strides = array<i32>} : memref<8x8x256xf32, #tpu.memory_space<vmem>>, vector<8x8x256xf32>,
    %c0_9 = arith.constant 0 : index
    %c0_10 = arith.constant 0 : index
    %10 = vector.load %arg5[%c0_9, %c0_10] : memref<16x256xbf16, #tpu.memory_space<vmem>>, vector<16x256xbf16>
    %cst_11 = arith.constant dense<0.000000e+00> : vector<64x256xf32>
    %11 = tpu.matmul %2, %10, %cst_11 {dimension_numbers = #tpu.dot_dimension_numbers<[1], [0], [0], [1], [0, 0, 1, 1], [], []>} : vector<64x16xbf16>, vector<16x256xbf16>, vector<64x256xf32> -> vector<64x256xf32>
    %c0_12 = arith.constant 0 : index
    %c0_13 = arith.constant 0 : index
    %12 = vector.load %arg7[%c0_12, %c0_13] : memref<1x256xf32, #tpu.memory_space<vmem>>, vector<1x256xf32>
    %13 = vector.broadcast %12 : vector<1x256xf32> to vector<64x256xf32>
    %14 = arith.addf %11, %13 : vector<64x256xf32>
    %15 = vector.shape_cast %14 : vector<64x256xf32> to vector<8x8x256xf32>
    %c0_14 = arith.constant 0 : index
    %c0_15 = arith.constant 0 : index
    %c0_16 = arith.constant 0 : index
    %16 = vector.load %arg13[%c0_14, %c0_15, %c0_16] : memref<8x8x256xf32, #tpu.memory_space<vmem>>, vector<8x8x256xf32>
    tpu.vector_store %arg13[%c0_14, %c0_15, %c0_16], %15 {strides = array<i32>} : memref<8x8x256xf32, #tpu.memory_space<vmem>>, vector<8x8x256xf32>,
    %c0_17 = arith.constant 0 : index
    %c0_18 = arith.constant 0 : index
    %17 = vector.load %arg3[%c0_17, %c0_18] : memref<64x256xf32, #tpu.memory_space<vmem>>, vector<64x256xf32>
    %c0_19 = arith.constant 0 : index
    %c0_20 = arith.constant 0 : index
    %18 = vector.load %arg6[%c0_19, %c0_20] : memref<64x256xf32, #tpu.memory_space<vmem>>, vector<64x256xf32>
    %cst_21 = arith.constant 0.000000e+00 : f32
    %19 = vector.broadcast %cst_21 : f32 to vector<8x64xf32>
    %c0_i32 = arith.constant 0 : i32
    %c7_i32 = arith.constant 7 : i32
    %20 = arith.subi %c7_i32, %c0_i32 : i32
    %21 = arith.index_cast %c0_i32 : i32 to index
    %c0_22 = arith.constant 0 : index
    %c0_23 = arith.constant 0 : index
    %22 = vector.load %arg12[%21, %c0_22, %c0_23] : memref<8x8x256xf32, #tpu.memory_space<vmem>>, vector<1x8x256xf32>
    %23 = vector.shape_cast %22 : vector<1x8x256xf32> to vector<8x256xf32>
    %cst_24 = arith.constant dense<0.000000e+00> : vector<8x256xf32>
    %24 = tpu.matmul %19, %17, %cst_24 {dimension_numbers = #tpu.dot_dimension_numbers<[1], [0], [0], [1], [0, 0, 1, 1], [], []>} : vector<8x64xf32>, vector<64x256xf32>, vector<8x256xf32> -> vector<8x256xf32>
    %25 = arith.addf %23, %24 : vector<8x256xf32>
    %26 = vector.extract_strided_slice %25 {offsets = [0, 0], sizes = [8, 64], strides = [1, 1]} : vector<8x256xf32> to vector<8x64xf32>
    %27 = arith.negf %26 : vector<8x64xf32>
    %28 = math.exp %27 : vector<8x64xf32>
    %cst_25 = arith.constant 1.000000e+00 : f32
    %29 = vector.broadcast %cst_25 : f32 to vector<8x64xf32>
    %30 = arith.addf %29, %28 : vector<8x64xf32>
    %31 = arith.divf %29, %30 : vector<8x64xf32>
    %32 = vector.extract_strided_slice %25 {offsets = [0, 64], sizes = [8, 64], strides = [1, 1]} : vector<8x256xf32> to vector<8x64xf32>
    %33 = arith.negf %32 : vector<8x64xf32>
    %34 = math.exp %33 : vector<8x64xf32>
    %cst_26 = arith.constant 1.000000e+00 : f32
    %35 = vector.broadcast %cst_26 : f32 to vector<8x64xf32>
    %36 = arith.addf %35, %34 : vector<8x64xf32>
    %37 = arith.divf %35, %36 : vector<8x64xf32>
    %38 = vector.extract_strided_slice %25 {offsets = [0, 128], sizes = [8, 64], strides = [1, 1]} : vector<8x256xf32> to vector<8x64xf32>
    %39 = math.tanh %38 : vector<8x64xf32>
    %40 = vector.extract_strided_slice %25 {offsets = [0, 192], sizes = [8, 64], strides = [1, 1]} : vector<8x256xf32> to vector<8x64xf32>
    %41 = arith.negf %40 : vector<8x64xf32>
    %42 = math.exp %41 : vector<8x64xf32>
    %cst_27 = arith.constant 1.000000e+00 : f32
    %43 = vector.broadcast %cst_27 : f32 to vector<8x64xf32>
    %44 = arith.addf %43, %42 : vector<8x64xf32>
    %45 = arith.divf %43, %44 : vector<8x64xf32>
    %46 = arith.mulf %37, %19 : vector<8x64xf32>
    %47 = arith.mulf %31, %39 : vector<8x64xf32>
    %48 = arith.addf %46, %47 : vector<8x64xf32>
    %49 = math.tanh %48 : vector<8x64xf32>
    %50 = arith.mulf %45, %49 : vector<8x64xf32>
    %51 = arith.index_cast %20 : i32 to index
    %c0_28 = arith.constant 0 : index
    %c0_29 = arith.constant 0 : index
    %52 = vector.load %arg13[%51, %c0_28, %c0_29] : memref<8x8x256xf32, #tpu.memory_space<vmem>>, vector<1x8x256xf32>
    %53 = vector.shape_cast %52 : vector<1x8x256xf32> to vector<8x256xf32>
    %cst_30 = arith.constant dense<0.000000e+00> : vector<8x256xf32>
    %54 = tpu.matmul %19, %18, %cst_30 {dimension_numbers = #tpu.dot_dimension_numbers<[1], [0], [0], [1], [0, 0, 1, 1], [], []>} : vector<8x64xf32>, vector<64x256xf32>, vector<8x256xf32> -> vector<8x256xf32>
    %55 = arith.addf %53, %54 : vector<8x256xf32>
    %56 = vector.extract_strided_slice %55 {offsets = [0, 0], sizes = [8, 64], strides = [1, 1]} : vector<8x256xf32> to vector<8x64xf32>
    %57 = arith.negf %56 : vector<8x64xf32>
    %58 = math.exp %57 : vector<8x64xf32>
    %cst_31 = arith.constant 1.000000e+00 : f32
    %59 = vector.broadcast %cst_31 : f32 to vector<8x64xf32>
    %60 = arith.addf %59, %58 : vector<8x64xf32>
    %61 = arith.divf %59, %60 : vector<8x64xf32>
    %62 = vector.extract_strided_slice %55 {offsets = [0, 64], sizes = [8, 64], strides = [1, 1]} : vector<8x256xf32> to vector<8x64xf32>
    %63 = arith.negf %62 : vector<8x64xf32>
    %64 = math.exp %63 : vector<8x64xf32>
    %cst_32 = arith.constant 1.000000e+00 : f32
    %65 = vector.broadcast %cst_32 : f32 to vector<8x64xf32>
    %66 = arith.addf %65, %64 : vector<8x64xf32>
    %67 = arith.divf %65, %66 : vector<8x64xf32>
    %68 = vector.extract_strided_slice %55 {offsets = [0, 128], sizes = [8, 64], strides = [1, 1]} : vector<8x256xf32> to vector<8x64xf32>
    %69 = math.tanh %68 : vector<8x64xf32>
    %70 = vector.extract_strided_slice %55 {offsets = [0, 192], sizes = [8, 64], strides = [1, 1]} : vector<8x256xf32> to vector<8x64xf32>
    %71 = arith.negf %70 : vector<8x64xf32>
    %72 = math.exp %71 : vector<8x64xf32>
    %cst_33 = arith.constant 1.000000e+00 : f32
    %73 = vector.broadcast %cst_33 : f32 to vector<8x64xf32>
    %74 = arith.addf %73, %72 : vector<8x64xf32>
    %75 = arith.divf %73, %74 : vector<8x64xf32>
    %76 = arith.mulf %67, %19 : vector<8x64xf32>
    %77 = arith.mulf %61, %69 : vector<8x64xf32>
    %78 = arith.addf %76, %77 : vector<8x64xf32>
    %79 = math.tanh %78 : vector<8x64xf32>
    %80 = arith.mulf %75, %79 : vector<8x64xf32>
    %81 = arith.index_cast %c0_i32 : i32 to index
    %c0_34 = arith.constant 0 : index
    %c0_35 = arith.constant 0 : index
    %82 = vector.load %arg11[%81, %c0_34, %c0_35] : memref<8x8x128xf32, #tpu.memory_space<vmem>>, vector<1x8x64xf32>
    %83 = vector.shape_cast %82 : vector<1x8x64xf32> to vector<8x64xf32>
    %84 = vector.shape_cast %50 : vector<8x64xf32> to vector<1x8x64xf32>
    tpu.vector_store %arg11[%81, %c0_34, %c0_35], %84 {strides = array<i32>} : memref<8x8x128xf32, #tpu.memory_space<vmem>>, vector<1x8x64xf32>,
    %85 = arith.index_cast %20 : i32 to index
    %c0_36 = arith.constant 0 : index
    %c64 = arith.constant 64 : index
    %86 = vector.load %arg11[%85, %c0_36, %c64] : memref<8x8x128xf32, #tpu.memory_space<vmem>>, vector<1x8x64xf32>
    %87 = vector.shape_cast %86 : vector<1x8x64xf32> to vector<8x64xf32>
    %88 = vector.shape_cast %80 : vector<8x64xf32> to vector<1x8x64xf32>
    tpu.vector_store %arg11[%85, %c0_36, %c64], %88 {strides = array<i32>} : memref<8x8x128xf32, #tpu.memory_space<vmem>>, vector<1x8x64xf32>,
    %c1_i32 = arith.constant 1 : i32
    %c7_i32_37 = arith.constant 7 : i32
    %89 = arith.subi %c7_i32_37, %c1_i32 : i32
    %90 = arith.index_cast %c1_i32 : i32 to index
    %c0_38 = arith.constant 0 : index
    %c0_39 = arith.constant 0 : index
    %91 = vector.load %arg12[%90, %c0_38, %c0_39] : memref<8x8x256xf32, #tpu.memory_space<vmem>>, vector<1x8x256xf32>
    %92 = vector.shape_cast %91 : vector<1x8x256xf32> to vector<8x256xf32>
    %cst_40 = arith.constant dense<0.000000e+00> : vector<8x256xf32>
    %93 = tpu.matmul %50, %17, %cst_40 {dimension_numbers = #tpu.dot_dimension_numbers<[1], [0], [0], [1], [0, 0, 1, 1], [], []>} : vector<8x64xf32>, vector<64x256xf32>, vector<8x256xf32> -> vector<8x256xf32>
    %94 = arith.addf %92, %93 : vector<8x256xf32>
    %95 = vector.extract_strided_slice %94 {offsets = [0, 0], sizes = [8, 64], strides = [1, 1]} : vector<8x256xf32> to vector<8x64xf32>
    %96 = arith.negf %95 : vector<8x64xf32>
    %97 = math.exp %96 : vector<8x64xf32>
    %cst_41 = arith.constant 1.000000e+00 : f32
    %98 = vector.broadcast %cst_41 : f32 to vector<8x64xf32>
    %99 = arith.addf %98, %97 : vector<8x64xf32>
    %100 = arith.divf %98, %99 : vector<8x64xf32>
    %101 = vector.extract_strided_slice %94 {offsets = [0, 64], sizes = [8, 64], strides = [1, 1]} : vector<8x256xf32> to vector<8x64xf32>
    %102 = arith.negf %101 : vector<8x64xf32>
    %103 = math.exp %102 : vector<8x64xf32>
    %cst_42 = arith.constant 1.000000e+00 : f32
    %104 = vector.broadcast %cst_42 : f32 to vector<8x64xf32>
    %105 = arith.addf %104, %103 : vector<8x64xf32>
    %106 = arith.divf %104, %105 : vector<8x64xf32>
    %107 = vector.extract_strided_slice %94 {offsets = [0, 128], sizes = [8, 64], strides = [1, 1]} : vector<8x256xf32> to vector<8x64xf32>
    %108 = math.tanh %107 : vector<8x64xf32>
    %109 = vector.extract_strided_slice %94 {offsets = [0, 192], sizes = [8, 64], strides = [1, 1]} : vector<8x256xf32> to vector<8x64xf32>
    %110 = arith.negf %109 : vector<8x64xf32>
    %111 = math.exp %110 : vector<8x64xf32>
    %cst_43 = arith.constant 1.000000e+00 : f32
    %112 = vector.broadcast %cst_43 : f32 to vector<8x64xf32>
    %113 = arith.addf %112, %111 : vector<8x64xf32>
    %114 = arith.divf %112, %113 : vector<8x64xf32>
    %115 = arith.mulf %106, %48 : vector<8x64xf32>
    %116 = arith.mulf %100, %108 : vector<8x64xf32>
    %117 = arith.addf %115, %116 : vector<8x64xf32>
    %118 = math.tanh %117 : vector<8x64xf32>
    %119 = arith.mulf %114, %118 : vector<8x64xf32>
    %120 = arith.index_cast %89 : i32 to index
    %c0_44 = arith.constant 0 : index
    %c0_45 = arith.constant 0 : index
    %121 = vector.load %arg13[%120, %c0_44, %c0_45] : memref<8x8x256xf32, #tpu.memory_space<vmem>>, vector<1x8x256xf32>
    %122 = vector.shape_cast %121 : vector<1x8x256xf32> to vector<8x256xf32>
    %cst_46 = arith.constant dense<0.000000e+00> : vector<8x256xf32>
    %123 = tpu.matmul %80, %18, %cst_46 {dimension_numbers = #tpu.dot_dimension_numbers<[1], [0], [0], [1], [0, 0, 1, 1], [], []>} : vector<8x64xf32>, vector<64x256xf32>, vector<8x256xf32> -> vector<8x256xf32>
    %124 = arith.addf %122, %123 : vector<8x256xf32>
    %125 = vector.extract_strided_slice %124 {offsets = [0, 0], sizes = [8, 64], strides = [1, 1]} : vector<8x256xf32> to vector<8x64xf32>
    %126 = arith.negf %125 : vector<8x64xf32>
    %127 = math.exp %126 : vector<8x64xf32>
    %cst_47 = arith.constant 1.000000e+00 : f32
    %128 = vector.broadcast %cst_47 : f32 to vector<8x64xf32>
    %129 = arith.addf %128, %127 : vector<8x64xf32>
    %130 = arith.divf %128, %129 : vector<8x64xf32>
    %131 = vector.extract_strided_slice %124 {offsets = [0, 64], sizes = [8, 64], strides = [1, 1]} : vector<8x256xf32> to vector<8x64xf32>
    %132 = arith.negf %131 : vector<8x64xf32>
    %133 = math.exp %132 : vector<8x64xf32>
    %cst_48 = arith.constant 1.000000e+00 : f32
    %134 = vector.broadcast %cst_48 : f32 to vector<8x64xf32>
    %135 = arith.addf %134, %133 : vector<8x64xf32>
    %136 = arith.divf %134, %135 : vector<8x64xf32>
    %137 = vector.extract_strided_slice %124 {offsets = [0, 128], sizes = [8, 64], strides = [1, 1]} : vector<8x256xf32> to vector<8x64xf32>
    %138 = math.tanh %137 : vector<8x64xf32>
    %139 = vector.extract_strided_slice %124 {offsets = [0, 192], sizes = [8, 64], strides = [1, 1]} : vector<8x256xf32> to vector<8x64xf32>
    %140 = arith.negf %139 : vector<8x64xf32>
    %141 = math.exp %140 : vector<8x64xf32>
    %cst_49 = arith.constant 1.000000e+00 : f32
    %142 = vector.broadcast %cst_49 : f32 to vector<8x64xf32>
    %143 = arith.addf %142, %141 : vector<8x64xf32>
    %144 = arith.divf %142, %143 : vector<8x64xf32>
    %145 = arith.mulf %136, %78 : vector<8x64xf32>
    %146 = arith.mulf %130, %138 : vector<8x64xf32>
    %147 = arith.addf %145, %146 : vector<8x64xf32>
    %148 = math.tanh %147 : vector<8x64xf32>
    %149 = arith.mulf %144, %148 : vector<8x64xf32>
    %150 = arith.index_cast %c1_i32 : i32 to index
    %c0_50 = arith.constant 0 : index
    %c0_51 = arith.constant 0 : index
    %151 = vector.load %arg11[%150, %c0_50, %c0_51] : memref<8x8x128xf32, #tpu.memory_space<vmem>>, vector<1x8x64xf32>
    %152 = vector.shape_cast %151 : vector<1x8x64xf32> to vector<8x64xf32>
    %153 = vector.shape_cast %119 : vector<8x64xf32> to vector<1x8x64xf32>
    tpu.vector_store %arg11[%150, %c0_50, %c0_51], %153 {strides = array<i32>} : memref<8x8x128xf32, #tpu.memory_space<vmem>>, vector<1x8x64xf32>,
    %154 = arith.index_cast %89 : i32 to index
    %c0_52 = arith.constant 0 : index
    %c64_53 = arith.constant 64 : index
    %155 = vector.load %arg11[%154, %c0_52, %c64_53] : memref<8x8x128xf32, #tpu.memory_space<vmem>>, vector<1x8x64xf32>
    %156 = vector.shape_cast %155 : vector<1x8x64xf32> to vector<8x64xf32>
    %157 = vector.shape_cast %149 : vector<8x64xf32> to vector<1x8x64xf32>
    tpu.vector_store %arg11[%154, %c0_52, %c64_53], %157 {strides = array<i32>} : memref<8x8x128xf32, #tpu.memory_space<vmem>>, vector<1x8x64xf32>,
    %c2_i32 = arith.constant 2 : i32
    %c7_i32_54 = arith.constant 7 : i32
    %158 = arith.subi %c7_i32_54, %c2_i32 : i32
    %159 = arith.index_cast %c2_i32 : i32 to index
    %c0_55 = arith.constant 0 : index
    %c0_56 = arith.constant 0 : index
    %160 = vector.load %arg12[%159, %c0_55, %c0_56] : memref<8x8x256xf32, #tpu.memory_space<vmem>>, vector<1x8x256xf32>
    %161 = vector.shape_cast %160 : vector<1x8x256xf32> to vector<8x256xf32>
    %cst_57 = arith.constant dense<0.000000e+00> : vector<8x256xf32>
    %162 = tpu.matmul %119, %17, %cst_57 {dimension_numbers = #tpu.dot_dimension_numbers<[1], [0], [0], [1], [0, 0, 1, 1], [], []>} : vector<8x64xf32>, vector<64x256xf32>, vector<8x256xf32> -> vector<8x256xf32>
    %163 = arith.addf %161, %162 : vector<8x256xf32>
    %164 = vector.extract_strided_slice %163 {offsets = [0, 0], sizes = [8, 64], strides = [1, 1]} : vector<8x256xf32> to vector<8x64xf32>
    %165 = arith.negf %164 : vector<8x64xf32>
    %166 = math.exp %165 : vector<8x64xf32>
    %cst_58 = arith.constant 1.000000e+00 : f32
    %167 = vector.broadcast %cst_58 : f32 to vector<8x64xf32>
    %168 = arith.addf %167, %166 : vector<8x64xf32>
    %169 = arith.divf %167, %168 : vector<8x64xf32>
    %170 = vector.extract_strided_slice %163 {offsets = [0, 64], sizes = [8, 64], strides = [1, 1]} : vector<8x256xf32> to vector<8x64xf32>
    %171 = arith.negf %170 : vector<8x64xf32>
    %172 = math.exp %171 : vector<8x64xf32>
    %cst_59 = arith.constant 1.000000e+00 : f32
    %173 = vector.broadcast %cst_59 : f32 to vector<8x64xf32>
    %174 = arith.addf %173, %172 : vector<8x64xf32>
    %175 = arith.divf %173, %174 : vector<8x64xf32>
    %176 = vector.extract_strided_slice %163 {offsets = [0, 128], sizes = [8, 64], strides = [1, 1]} : vector<8x256xf32> to vector<8x64xf32>
    %177 = math.tanh %176 : vector<8x64xf32>
    %178 = vector.extract_strided_slice %163 {offsets = [0, 192], sizes = [8, 64], strides = [1, 1]} : vector<8x256xf32> to vector<8x64xf32>
    %179 = arith.negf %178 : vector<8x64xf32>
    %180 = math.exp %179 : vector<8x64xf32>
    %cst_60 = arith.constant 1.000000e+00 : f32
    %181 = vector.broadcast %cst_60 : f32 to vector<8x64xf32>
    %182 = arith.addf %181, %180 : vector<8x64xf32>
    %183 = arith.divf %181, %182 : vector<8x64xf32>
    %184 = arith.mulf %175, %117 : vector<8x64xf32>
    %185 = arith.mulf %169, %177 : vector<8x64xf32>
    %186 = arith.addf %184, %185 : vector<8x64xf32>
    %187 = math.tanh %186 : vector<8x64xf32>
    %188 = arith.mulf %183, %187 : vector<8x64xf32>
    %189 = arith.index_cast %158 : i32 to index
    %c0_61 = arith.constant 0 : index
    %c0_62 = arith.constant 0 : index
    %190 = vector.load %arg13[%189, %c0_61, %c0_62] : memref<8x8x256xf32, #tpu.memory_space<vmem>>, vector<1x8x256xf32>
    %191 = vector.shape_cast %190 : vector<1x8x256xf32> to vector<8x256xf32>
    %cst_63 = arith.constant dense<0.000000e+00> : vector<8x256xf32>
    %192 = tpu.matmul %149, %18, %cst_63 {dimension_numbers = #tpu.dot_dimension_numbers<[1], [0], [0], [1], [0, 0, 1, 1], [], []>} : vector<8x64xf32>, vector<64x256xf32>, vector<8x256xf32> -> vector<8x256xf32>
    %193 = arith.addf %191, %192 : vector<8x256xf32>
    %194 = vector.extract_strided_slice %193 {offsets = [0, 0], sizes = [8, 64], strides = [1, 1]} : vector<8x256xf32> to vector<8x64xf32>
    %195 = arith.negf %194 : vector<8x64xf32>
    %196 = math.exp %195 : vector<8x64xf32>
    %cst_64 = arith.constant 1.000000e+00 : f32
    %197 = vector.broadcast %cst_64 : f32 to vector<8x64xf32>
    %198 = arith.addf %197, %196 : vector<8x64xf32>
    %199 = arith.divf %197, %198 : vector<8x64xf32>
    %200 = vector.extract_strided_slice %193 {offsets = [0, 64], sizes = [8, 64], strides = [1, 1]} : vector<8x256xf32> to vector<8x64xf32>
    %201 = arith.negf %200 : vector<8x64xf32>
    %202 = math.exp %201 : vector<8x64xf32>
    %cst_65 = arith.constant 1.000000e+00 : f32
    %203 = vector.broadcast %cst_65 : f32 to vector<8x64xf32>
    %204 = arith.addf %203, %202 : vector<8x64xf32>
    %205 = arith.divf %203, %204 : vector<8x64xf32>
    %206 = vector.extract_strided_slice %193 {offsets = [0, 128], sizes = [8, 64], strides = [1, 1]} : vector<8x256xf32> to vector<8x64xf32>
    %207 = math.tanh %206 : vector<8x64xf32>
    %208 = vector.extract_strided_slice %193 {offsets = [0, 192], sizes = [8, 64], strides = [1, 1]} : vector<8x256xf32> to vector<8x64xf32>
    %209 = arith.negf %208 : vector<8x64xf32>
    %210 = math.exp %209 : vector<8x64xf32>
    %cst_66 = arith.constant 1.000000e+00 : f32
    %211 = vector.broadcast %cst_66 : f32 to vector<8x64xf32>
    %212 = arith.addf %211, %210 : vector<8x64xf32>
    %213 = arith.divf %211, %212 : vector<8x64xf32>
    %214 = arith.mulf %205, %147 : vector<8x64xf32>
    %215 = arith.mulf %199, %207 : vector<8x64xf32>
    %216 = arith.addf %214, %215 : vector<8x64xf32>
    %217 = math.tanh %216 : vector<8x64xf32>
    %218 = arith.mulf %213, %217 : vector<8x64xf32>
    %219 = arith.index_cast %c2_i32 : i32 to index
    %c0_67 = arith.constant 0 : index
    %c0_68 = arith.constant 0 : index
    %220 = vector.load %arg11[%219, %c0_67, %c0_68] : memref<8x8x128xf32, #tpu.memory_space<vmem>>, vector<1x8x64xf32>
    %221 = vector.shape_cast %220 : vector<1x8x64xf32> to vector<8x64xf32>
    %222 = vector.shape_cast %188 : vector<8x64xf32> to vector<1x8x64xf32>
    tpu.vector_store %arg11[%219, %c0_67, %c0_68], %222 {strides = array<i32>} : memref<8x8x128xf32, #tpu.memory_space<vmem>>, vector<1x8x64xf32>,
    %223 = arith.index_cast %158 : i32 to index
    %c0_69 = arith.constant 0 : index
    %c64_70 = arith.constant 64 : index
    %224 = vector.load %arg11[%223, %c0_69, %c64_70] : memref<8x8x128xf32, #tpu.memory_space<vmem>>, vector<1x8x64xf32>
    %225 = vector.shape_cast %224 : vector<1x8x64xf32> to vector<8x64xf32>
    %226 = vector.shape_cast %218 : vector<8x64xf32> to vector<1x8x64xf32>
    tpu.vector_store %arg11[%223, %c0_69, %c64_70], %226 {strides = array<i32>} : memref<8x8x128xf32, #tpu.memory_space<vmem>>, vector<1x8x64xf32>,
    %c3_i32 = arith.constant 3 : i32
    %c7_i32_71 = arith.constant 7 : i32
    %227 = arith.subi %c7_i32_71, %c3_i32 : i32
    %228 = arith.index_cast %c3_i32 : i32 to index
    %c0_72 = arith.constant 0 : index
    %c0_73 = arith.constant 0 : index
    %229 = vector.load %arg12[%228, %c0_72, %c0_73] : memref<8x8x256xf32, #tpu.memory_space<vmem>>, vector<1x8x256xf32>
    %230 = vector.shape_cast %229 : vector<1x8x256xf32> to vector<8x256xf32>
    %cst_74 = arith.constant dense<0.000000e+00> : vector<8x256xf32>
    %231 = tpu.matmul %188, %17, %cst_74 {dimension_numbers = #tpu.dot_dimension_numbers<[1], [0], [0], [1], [0, 0, 1, 1], [], []>} : vector<8x64xf32>, vector<64x256xf32>, vector<8x256xf32> -> vector<8x256xf32>
    %232 = arith.addf %230, %231 : vector<8x256xf32>
    %233 = vector.extract_strided_slice %232 {offsets = [0, 0], sizes = [8, 64], strides = [1, 1]} : vector<8x256xf32> to vector<8x64xf32>
    %234 = arith.negf %233 : vector<8x64xf32>
    %235 = math.exp %234 : vector<8x64xf32>
    %cst_75 = arith.constant 1.000000e+00 : f32
    %236 = vector.broadcast %cst_75 : f32 to vector<8x64xf32>
    %237 = arith.addf %236, %235 : vector<8x64xf32>
    %238 = arith.divf %236, %237 : vector<8x64xf32>
    %239 = vector.extract_strided_slice %232 {offsets = [0, 64], sizes = [8, 64], strides = [1, 1]} : vector<8x256xf32> to vector<8x64xf32>
    %240 = arith.negf %239 : vector<8x64xf32>
    %241 = math.exp %240 : vector<8x64xf32>
    %cst_76 = arith.constant 1.000000e+00 : f32
    %242 = vector.broadcast %cst_76 : f32 to vector<8x64xf32>
    %243 = arith.addf %242, %241 : vector<8x64xf32>
    %244 = arith.divf %242, %243 : vector<8x64xf32>
    %245 = vector.extract_strided_slice %232 {offsets = [0, 128], sizes = [8, 64], strides = [1, 1]} : vector<8x256xf32> to vector<8x64xf32>
    %246 = math.tanh %245 : vector<8x64xf32>
    %247 = vector.extract_strided_slice %232 {offsets = [0, 192], sizes = [8, 64], strides = [1, 1]} : vector<8x256xf32> to vector<8x64xf32>
    %248 = arith.negf %247 : vector<8x64xf32>
    %249 = math.exp %248 : vector<8x64xf32>
    %cst_77 = arith.constant 1.000000e+00 : f32
    %250 = vector.broadcast %cst_77 : f32 to vector<8x64xf32>
    %251 = arith.addf %250, %249 : vector<8x64xf32>
    %252 = arith.divf %250, %251 : vector<8x64xf32>
    %253 = arith.mulf %244, %186 : vector<8x64xf32>
    %254 = arith.mulf %238, %246 : vector<8x64xf32>
    %255 = arith.addf %253, %254 : vector<8x64xf32>
    %256 = math.tanh %255 : vector<8x64xf32>
    %257 = arith.mulf %252, %256 : vector<8x64xf32>
    %258 = arith.index_cast %227 : i32 to index
    %c0_78 = arith.constant 0 : index
    %c0_79 = arith.constant 0 : index
    %259 = vector.load %arg13[%258, %c0_78, %c0_79] : memref<8x8x256xf32, #tpu.memory_space<vmem>>, vector<1x8x256xf32>
    %260 = vector.shape_cast %259 : vector<1x8x256xf32> to vector<8x256xf32>
    %cst_80 = arith.constant dense<0.000000e+00> : vector<8x256xf32>
    %261 = tpu.matmul %218, %18, %cst_80 {dimension_numbers = #tpu.dot_dimension_numbers<[1], [0], [0], [1], [0, 0, 1, 1], [], []>} : vector<8x64xf32>, vector<64x256xf32>, vector<8x256xf32> -> vector<8x256xf32>
    %262 = arith.addf %260, %261 : vector<8x256xf32>
    %263 = vector.extract_strided_slice %262 {offsets = [0, 0], sizes = [8, 64], strides = [1, 1]} : vector<8x256xf32> to vector<8x64xf32>
    %264 = arith.negf %263 : vector<8x64xf32>
    %265 = math.exp %264 : vector<8x64xf32>
    %cst_81 = arith.constant 1.000000e+00 : f32
    %266 = vector.broadcast %cst_81 : f32 to vector<8x64xf32>
    %267 = arith.addf %266, %265 : vector<8x64xf32>
    %268 = arith.divf %266, %267 : vector<8x64xf32>
    %269 = vector.extract_strided_slice %262 {offsets = [0, 64], sizes = [8, 64], strides = [1, 1]} : vector<8x256xf32> to vector<8x64xf32>
    %270 = arith.negf %269 : vector<8x64xf32>
    %271 = math.exp %270 : vector<8x64xf32>
    %cst_82 = arith.constant 1.000000e+00 : f32
    %272 = vector.broadcast %cst_82 : f32 to vector<8x64xf32>
    %273 = arith.addf %272, %271 : vector<8x64xf32>
    %274 = arith.divf %272, %273 : vector<8x64xf32>
    %275 = vector.extract_strided_slice %262 {offsets = [0, 128], sizes = [8, 64], strides = [1, 1]} : vector<8x256xf32> to vector<8x64xf32>
    %276 = math.tanh %275 : vector<8x64xf32>
    %277 = vector.extract_strided_slice %262 {offsets = [0, 192], sizes = [8, 64], strides = [1, 1]} : vector<8x256xf32> to vector<8x64xf32>
    %278 = arith.negf %277 : vector<8x64xf32>
    %279 = math.exp %278 : vector<8x64xf32>
    %cst_83 = arith.constant 1.000000e+00 : f32
    %280 = vector.broadcast %cst_83 : f32 to vector<8x64xf32>
    %281 = arith.addf %280, %279 : vector<8x64xf32>
    %282 = arith.divf %280, %281 : vector<8x64xf32>
    %283 = arith.mulf %274, %216 : vector<8x64xf32>
    %284 = arith.mulf %268, %276 : vector<8x64xf32>
    %285 = arith.addf %283, %284 : vector<8x64xf32>
    %286 = math.tanh %285 : vector<8x64xf32>
    %287 = arith.mulf %282, %286 : vector<8x64xf32>
    %288 = arith.index_cast %c3_i32 : i32 to index
    %c0_84 = arith.constant 0 : index
    %c0_85 = arith.constant 0 : index
    %289 = vector.load %arg11[%288, %c0_84, %c0_85] : memref<8x8x128xf32, #tpu.memory_space<vmem>>, vector<1x8x64xf32>
    %290 = vector.shape_cast %289 : vector<1x8x64xf32> to vector<8x64xf32>
    %291 = vector.shape_cast %257 : vector<8x64xf32> to vector<1x8x64xf32>
    tpu.vector_store %arg11[%288, %c0_84, %c0_85], %291 {strides = array<i32>} : memref<8x8x128xf32, #tpu.memory_space<vmem>>, vector<1x8x64xf32>,
    %292 = arith.index_cast %227 : i32 to index
    %c0_86 = arith.constant 0 : index
    %c64_87 = arith.constant 64 : index
    %293 = vector.load %arg11[%292, %c0_86, %c64_87] : memref<8x8x128xf32, #tpu.memory_space<vmem>>, vector<1x8x64xf32>
    %294 = vector.shape_cast %293 : vector<1x8x64xf32> to vector<8x64xf32>
    %295 = vector.shape_cast %287 : vector<8x64xf32> to vector<1x8x64xf32>
    tpu.vector_store %arg11[%292, %c0_86, %c64_87], %295 {strides = array<i32>} : memref<8x8x128xf32, #tpu.memory_space<vmem>>, vector<1x8x64xf32>,
    %c4_i32 = arith.constant 4 : i32
    %c7_i32_88 = arith.constant 7 : i32
    %296 = arith.subi %c7_i32_88, %c4_i32 : i32
    %297 = arith.index_cast %c4_i32 : i32 to index
    %c0_89 = arith.constant 0 : index
    %c0_90 = arith.constant 0 : index
    %298 = vector.load %arg12[%297, %c0_89, %c0_90] : memref<8x8x256xf32, #tpu.memory_space<vmem>>, vector<1x8x256xf32>
    %299 = vector.shape_cast %298 : vector<1x8x256xf32> to vector<8x256xf32>
    %cst_91 = arith.constant dense<0.000000e+00> : vector<8x256xf32>
    %300 = tpu.matmul %257, %17, %cst_91 {dimension_numbers = #tpu.dot_dimension_numbers<[1], [0], [0], [1], [0, 0, 1, 1], [], []>} : vector<8x64xf32>, vector<64x256xf32>, vector<8x256xf32> -> vector<8x256xf32>
    %301 = arith.addf %299, %300 : vector<8x256xf32>
    %302 = vector.extract_strided_slice %301 {offsets = [0, 0], sizes = [8, 64], strides = [1, 1]} : vector<8x256xf32> to vector<8x64xf32>
    %303 = arith.negf %302 : vector<8x64xf32>
    %304 = math.exp %303 : vector<8x64xf32>
    %cst_92 = arith.constant 1.000000e+00 : f32
    %305 = vector.broadcast %cst_92 : f32 to vector<8x64xf32>
    %306 = arith.addf %305, %304 : vector<8x64xf32>
    %307 = arith.divf %305, %306 : vector<8x64xf32>
    %308 = vector.extract_strided_slice %301 {offsets = [0, 64], sizes = [8, 64], strides = [1, 1]} : vector<8x256xf32> to vector<8x64xf32>
    %309 = arith.negf %308 : vector<8x64xf32>
    %310 = math.exp %309 : vector<8x64xf32>
    %cst_93 = arith.constant 1.000000e+00 : f32
    %311 = vector.broadcast %cst_93 : f32 to vector<8x64xf32>
    %312 = arith.addf %311, %310 : vector<8x64xf32>
    %313 = arith.divf %311, %312 : vector<8x64xf32>
    %314 = vector.extract_strided_slice %301 {offsets = [0, 128], sizes = [8, 64], strides = [1, 1]} : vector<8x256xf32> to vector<8x64xf32>
    %315 = math.tanh %314 : vector<8x64xf32>
    %316 = vector.extract_strided_slice %301 {offsets = [0, 192], sizes = [8, 64], strides = [1, 1]} : vector<8x256xf32> to vector<8x64xf32>
    %317 = arith.negf %316 : vector<8x64xf32>
    %318 = math.exp %317 : vector<8x64xf32>
    %cst_94 = arith.constant 1.000000e+00 : f32
    %319 = vector.broadcast %cst_94 : f32 to vector<8x64xf32>
    %320 = arith.addf %319, %318 : vector<8x64xf32>
    %321 = arith.divf %319, %320 : vector<8x64xf32>
    %322 = arith.mulf %313, %255 : vector<8x64xf32>
    %323 = arith.mulf %307, %315 : vector<8x64xf32>
    %324 = arith.addf %322, %323 : vector<8x64xf32>
    %325 = math.tanh %324 : vector<8x64xf32>
    %326 = arith.mulf %321, %325 : vector<8x64xf32>
    %327 = arith.index_cast %296 : i32 to index
    %c0_95 = arith.constant 0 : index
    %c0_96 = arith.constant 0 : index
    %328 = vector.load %arg13[%327, %c0_95, %c0_96] : memref<8x8x256xf32, #tpu.memory_space<vmem>>, vector<1x8x256xf32>
    %329 = vector.shape_cast %328 : vector<1x8x256xf32> to vector<8x256xf32>
    %cst_97 = arith.constant dense<0.000000e+00> : vector<8x256xf32>
    %330 = tpu.matmul %287, %18, %cst_97 {dimension_numbers = #tpu.dot_dimension_numbers<[1], [0], [0], [1], [0, 0, 1, 1], [], []>} : vector<8x64xf32>, vector<64x256xf32>, vector<8x256xf32> -> vector<8x256xf32>
    %331 = arith.addf %329, %330 : vector<8x256xf32>
    %332 = vector.extract_strided_slice %331 {offsets = [0, 0], sizes = [8, 64], strides = [1, 1]} : vector<8x256xf32> to vector<8x64xf32>
    %333 = arith.negf %332 : vector<8x64xf32>
    %334 = math.exp %333 : vector<8x64xf32>
    %cst_98 = arith.constant 1.000000e+00 : f32
    %335 = vector.broadcast %cst_98 : f32 to vector<8x64xf32>
    %336 = arith.addf %335, %334 : vector<8x64xf32>
    %337 = arith.divf %335, %336 : vector<8x64xf32>
    %338 = vector.extract_strided_slice %331 {offsets = [0, 64], sizes = [8, 64], strides = [1, 1]} : vector<8x256xf32> to vector<8x64xf32>
    %339 = arith.negf %338 : vector<8x64xf32>
    %340 = math.exp %339 : vector<8x64xf32>
    %cst_99 = arith.constant 1.000000e+00 : f32
    %341 = vector.broadcast %cst_99 : f32 to vector<8x64xf32>
    %342 = arith.addf %341, %340 : vector<8x64xf32>
    %343 = arith.divf %341, %342 : vector<8x64xf32>
    %344 = vector.extract_strided_slice %331 {offsets = [0, 128], sizes = [8, 64], strides = [1, 1]} : vector<8x256xf32> to vector<8x64xf32>
    %345 = math.tanh %344 : vector<8x64xf32>
    %346 = vector.extract_strided_slice %331 {offsets = [0, 192], sizes = [8, 64], strides = [1, 1]} : vector<8x256xf32> to vector<8x64xf32>
    %347 = arith.negf %346 : vector<8x64xf32>
    %348 = math.exp %347 : vector<8x64xf32>
    %cst_100 = arith.constant 1.000000e+00 : f32
    %349 = vector.broadcast %cst_100 : f32 to vector<8x64xf32>
    %350 = arith.addf %349, %348 : vector<8x64xf32>
    %351 = arith.divf %349, %350 : vector<8x64xf32>
    %352 = arith.mulf %343, %285 : vector<8x64xf32>
    %353 = arith.mulf %337, %345 : vector<8x64xf32>
    %354 = arith.addf %352, %353 : vector<8x64xf32>
    %355 = math.tanh %354 : vector<8x64xf32>
    %356 = arith.mulf %351, %355 : vector<8x64xf32>
    %357 = arith.index_cast %c4_i32 : i32 to index
    %c0_101 = arith.constant 0 : index
    %c0_102 = arith.constant 0 : index
    %358 = vector.load %arg11[%357, %c0_101, %c0_102] : memref<8x8x128xf32, #tpu.memory_space<vmem>>, vector<1x8x64xf32>
    %359 = vector.shape_cast %358 : vector<1x8x64xf32> to vector<8x64xf32>
    %360 = vector.shape_cast %326 : vector<8x64xf32> to vector<1x8x64xf32>
    tpu.vector_store %arg11[%357, %c0_101, %c0_102], %360 {strides = array<i32>} : memref<8x8x128xf32, #tpu.memory_space<vmem>>, vector<1x8x64xf32>,
    %361 = arith.index_cast %296 : i32 to index
    %c0_103 = arith.constant 0 : index
    %c64_104 = arith.constant 64 : index
    %362 = vector.load %arg11[%361, %c0_103, %c64_104] : memref<8x8x128xf32, #tpu.memory_space<vmem>>, vector<1x8x64xf32>
    %363 = vector.shape_cast %362 : vector<1x8x64xf32> to vector<8x64xf32>
    %364 = vector.shape_cast %356 : vector<8x64xf32> to vector<1x8x64xf32>
    tpu.vector_store %arg11[%361, %c0_103, %c64_104], %364 {strides = array<i32>} : memref<8x8x128xf32, #tpu.memory_space<vmem>>, vector<1x8x64xf32>,
    %c5_i32 = arith.constant 5 : i32
    %c7_i32_105 = arith.constant 7 : i32
    %365 = arith.subi %c7_i32_105, %c5_i32 : i32
    %366 = arith.index_cast %c5_i32 : i32 to index
    %c0_106 = arith.constant 0 : index
    %c0_107 = arith.constant 0 : index
    %367 = vector.load %arg12[%366, %c0_106, %c0_107] : memref<8x8x256xf32, #tpu.memory_space<vmem>>, vector<1x8x256xf32>
    %368 = vector.shape_cast %367 : vector<1x8x256xf32> to vector<8x256xf32>
    %cst_108 = arith.constant dense<0.000000e+00> : vector<8x256xf32>
    %369 = tpu.matmul %326, %17, %cst_108 {dimension_numbers = #tpu.dot_dimension_numbers<[1], [0], [0], [1], [0, 0, 1, 1], [], []>} : vector<8x64xf32>, vector<64x256xf32>, vector<8x256xf32> -> vector<8x256xf32>
    %370 = arith.addf %368, %369 : vector<8x256xf32>
    %371 = vector.extract_strided_slice %370 {offsets = [0, 0], sizes = [8, 64], strides = [1, 1]} : vector<8x256xf32> to vector<8x64xf32>
    %372 = arith.negf %371 : vector<8x64xf32>
    %373 = math.exp %372 : vector<8x64xf32>
    %cst_109 = arith.constant 1.000000e+00 : f32
    %374 = vector.broadcast %cst_109 : f32 to vector<8x64xf32>
    %375 = arith.addf %374, %373 : vector<8x64xf32>
    %376 = arith.divf %374, %375 : vector<8x64xf32>
    %377 = vector.extract_strided_slice %370 {offsets = [0, 64], sizes = [8, 64], strides = [1, 1]} : vector<8x256xf32> to vector<8x64xf32>
    %378 = arith.negf %377 : vector<8x64xf32>
    %379 = math.exp %378 : vector<8x64xf32>
    %cst_110 = arith.constant 1.000000e+00 : f32
    %380 = vector.broadcast %cst_110 : f32 to vector<8x64xf32>
    %381 = arith.addf %380, %379 : vector<8x64xf32>
    %382 = arith.divf %380, %381 : vector<8x64xf32>
    %383 = vector.extract_strided_slice %370 {offsets = [0, 128], sizes = [8, 64], strides = [1, 1]} : vector<8x256xf32> to vector<8x64xf32>
    %384 = math.tanh %383 : vector<8x64xf32>
    %385 = vector.extract_strided_slice %370 {offsets = [0, 192], sizes = [8, 64], strides = [1, 1]} : vector<8x256xf32> to vector<8x64xf32>
    %386 = arith.negf %385 : vector<8x64xf32>
    %387 = math.exp %386 : vector<8x64xf32>
    %cst_111 = arith.constant 1.000000e+00 : f32
    %388 = vector.broadcast %cst_111 : f32 to vector<8x64xf32>
    %389 = arith.addf %388, %387 : vector<8x64xf32>
    %390 = arith.divf %388, %389 : vector<8x64xf32>
    %391 = arith.mulf %382, %324 : vector<8x64xf32>
    %392 = arith.mulf %376, %384 : vector<8x64xf32>
    %393 = arith.addf %391, %392 : vector<8x64xf32>
    %394 = math.tanh %393 : vector<8x64xf32>
    %395 = arith.mulf %390, %394 : vector<8x64xf32>
    %396 = arith.index_cast %365 : i32 to index
    %c0_112 = arith.constant 0 : index
    %c0_113 = arith.constant 0 : index
    %397 = vector.load %arg13[%396, %c0_112, %c0_113] : memref<8x8x256xf32, #tpu.memory_space<vmem>>, vector<1x8x256xf32>
    %398 = vector.shape_cast %397 : vector<1x8x256xf32> to vector<8x256xf32>
    %cst_114 = arith.constant dense<0.000000e+00> : vector<8x256xf32>
    %399 = tpu.matmul %356, %18, %cst_114 {dimension_numbers = #tpu.dot_dimension_numbers<[1], [0], [0], [1], [0, 0, 1, 1], [], []>} : vector<8x64xf32>, vector<64x256xf32>, vector<8x256xf32> -> vector<8x256xf32>
    %400 = arith.addf %398, %399 : vector<8x256xf32>
    %401 = vector.extract_strided_slice %400 {offsets = [0, 0], sizes = [8, 64], strides = [1, 1]} : vector<8x256xf32> to vector<8x64xf32>
    %402 = arith.negf %401 : vector<8x64xf32>
    %403 = math.exp %402 : vector<8x64xf32>
    %cst_115 = arith.constant 1.000000e+00 : f32
    %404 = vector.broadcast %cst_115 : f32 to vector<8x64xf32>
    %405 = arith.addf %404, %403 : vector<8x64xf32>
    %406 = arith.divf %404, %405 : vector<8x64xf32>
    %407 = vector.extract_strided_slice %400 {offsets = [0, 64], sizes = [8, 64], strides = [1, 1]} : vector<8x256xf32> to vector<8x64xf32>
    %408 = arith.negf %407 : vector<8x64xf32>
    %409 = math.exp %408 : vector<8x64xf32>
    %cst_116 = arith.constant 1.000000e+00 : f32
    %410 = vector.broadcast %cst_116 : f32 to vector<8x64xf32>
    %411 = arith.addf %410, %409 : vector<8x64xf32>
    %412 = arith.divf %410, %411 : vector<8x64xf32>
    %413 = vector.extract_strided_slice %400 {offsets = [0, 128], sizes = [8, 64], strides = [1, 1]} : vector<8x256xf32> to vector<8x64xf32>
    %414 = math.tanh %413 : vector<8x64xf32>
    %415 = vector.extract_strided_slice %400 {offsets = [0, 192], sizes = [8, 64], strides = [1, 1]} : vector<8x256xf32> to vector<8x64xf32>
    %416 = arith.negf %415 : vector<8x64xf32>
    %417 = math.exp %416 : vector<8x64xf32>
    %cst_117 = arith.constant 1.000000e+00 : f32
    %418 = vector.broadcast %cst_117 : f32 to vector<8x64xf32>
    %419 = arith.addf %418, %417 : vector<8x64xf32>
    %420 = arith.divf %418, %419 : vector<8x64xf32>
    %421 = arith.mulf %412, %354 : vector<8x64xf32>
    %422 = arith.mulf %406, %414 : vector<8x64xf32>
    %423 = arith.addf %421, %422 : vector<8x64xf32>
    %424 = math.tanh %423 : vector<8x64xf32>
    %425 = arith.mulf %420, %424 : vector<8x64xf32>
    %426 = arith.index_cast %c5_i32 : i32 to index
    %c0_118 = arith.constant 0 : index
    %c0_119 = arith.constant 0 : index
    %427 = vector.load %arg11[%426, %c0_118, %c0_119] : memref<8x8x128xf32, #tpu.memory_space<vmem>>, vector<1x8x64xf32>
    %428 = vector.shape_cast %427 : vector<1x8x64xf32> to vector<8x64xf32>
    %429 = vector.shape_cast %395 : vector<8x64xf32> to vector<1x8x64xf32>
    tpu.vector_store %arg11[%426, %c0_118, %c0_119], %429 {strides = array<i32>} : memref<8x8x128xf32, #tpu.memory_space<vmem>>, vector<1x8x64xf32>,
    %430 = arith.index_cast %365 : i32 to index
    %c0_120 = arith.constant 0 : index
    %c64_121 = arith.constant 64 : index
    %431 = vector.load %arg11[%430, %c0_120, %c64_121] : memref<8x8x128xf32, #tpu.memory_space<vmem>>, vector<1x8x64xf32>
    %432 = vector.shape_cast %431 : vector<1x8x64xf32> to vector<8x64xf32>
    %433 = vector.shape_cast %425 : vector<8x64xf32> to vector<1x8x64xf32>
    tpu.vector_store %arg11[%430, %c0_120, %c64_121], %433 {strides = array<i32>} : memref<8x8x128xf32, #tpu.memory_space<vmem>>, vector<1x8x64xf32>,
    %c6_i32 = arith.constant 6 : i32
    %c7_i32_122 = arith.constant 7 : i32
    %434 = arith.subi %c7_i32_122, %c6_i32 : i32
    %435 = arith.index_cast %c6_i32 : i32 to index
    %c0_123 = arith.constant 0 : index
    %c0_124 = arith.constant 0 : index
    %436 = vector.load %arg12[%435, %c0_123, %c0_124] : memref<8x8x256xf32, #tpu.memory_space<vmem>>, vector<1x8x256xf32>
    %437 = vector.shape_cast %436 : vector<1x8x256xf32> to vector<8x256xf32>
    %cst_125 = arith.constant dense<0.000000e+00> : vector<8x256xf32>
    %438 = tpu.matmul %395, %17, %cst_125 {dimension_numbers = #tpu.dot_dimension_numbers<[1], [0], [0], [1], [0, 0, 1, 1], [], []>} : vector<8x64xf32>, vector<64x256xf32>, vector<8x256xf32> -> vector<8x256xf32>
    %439 = arith.addf %437, %438 : vector<8x256xf32>
    %440 = vector.extract_strided_slice %439 {offsets = [0, 0], sizes = [8, 64], strides = [1, 1]} : vector<8x256xf32> to vector<8x64xf32>
    %441 = arith.negf %440 : vector<8x64xf32>
    %442 = math.exp %441 : vector<8x64xf32>
    %cst_126 = arith.constant 1.000000e+00 : f32
    %443 = vector.broadcast %cst_126 : f32 to vector<8x64xf32>
    %444 = arith.addf %443, %442 : vector<8x64xf32>
    %445 = arith.divf %443, %444 : vector<8x64xf32>
    %446 = vector.extract_strided_slice %439 {offsets = [0, 64], sizes = [8, 64], strides = [1, 1]} : vector<8x256xf32> to vector<8x64xf32>
    %447 = arith.negf %446 : vector<8x64xf32>
    %448 = math.exp %447 : vector<8x64xf32>
    %cst_127 = arith.constant 1.000000e+00 : f32
    %449 = vector.broadcast %cst_127 : f32 to vector<8x64xf32>
    %450 = arith.addf %449, %448 : vector<8x64xf32>
    %451 = arith.divf %449, %450 : vector<8x64xf32>
    %452 = vector.extract_strided_slice %439 {offsets = [0, 128], sizes = [8, 64], strides = [1, 1]} : vector<8x256xf32> to vector<8x64xf32>
    %453 = math.tanh %452 : vector<8x64xf32>
    %454 = vector.extract_strided_slice %439 {offsets = [0, 192], sizes = [8, 64], strides = [1, 1]} : vector<8x256xf32> to vector<8x64xf32>
    %455 = arith.negf %454 : vector<8x64xf32>
    %456 = math.exp %455 : vector<8x64xf32>
    %cst_128 = arith.constant 1.000000e+00 : f32
    %457 = vector.broadcast %cst_128 : f32 to vector<8x64xf32>
    %458 = arith.addf %457, %456 : vector<8x64xf32>
    %459 = arith.divf %457, %458 : vector<8x64xf32>
    %460 = arith.mulf %451, %393 : vector<8x64xf32>
    %461 = arith.mulf %445, %453 : vector<8x64xf32>
    %462 = arith.addf %460, %461 : vector<8x64xf32>
    %463 = math.tanh %462 : vector<8x64xf32>
    %464 = arith.mulf %459, %463 : vector<8x64xf32>
    %465 = arith.index_cast %434 : i32 to index
    %c0_129 = arith.constant 0 : index
    %c0_130 = arith.constant 0 : index
    %466 = vector.load %arg13[%465, %c0_129, %c0_130] : memref<8x8x256xf32, #tpu.memory_space<vmem>>, vector<1x8x256xf32>
    %467 = vector.shape_cast %466 : vector<1x8x256xf32> to vector<8x256xf32>
    %cst_131 = arith.constant dense<0.000000e+00> : vector<8x256xf32>
    %468 = tpu.matmul %425, %18, %cst_131 {dimension_numbers = #tpu.dot_dimension_numbers<[1], [0], [0], [1], [0, 0, 1, 1], [], []>} : vector<8x64xf32>, vector<64x256xf32>, vector<8x256xf32> -> vector<8x256xf32>
    %469 = arith.addf %467, %468 : vector<8x256xf32>
    %470 = vector.extract_strided_slice %469 {offsets = [0, 0], sizes = [8, 64], strides = [1, 1]} : vector<8x256xf32> to vector<8x64xf32>
    %471 = arith.negf %470 : vector<8x64xf32>
    %472 = math.exp %471 : vector<8x64xf32>
    %cst_132 = arith.constant 1.000000e+00 : f32
    %473 = vector.broadcast %cst_132 : f32 to vector<8x64xf32>
    %474 = arith.addf %473, %472 : vector<8x64xf32>
    %475 = arith.divf %473, %474 : vector<8x64xf32>
    %476 = vector.extract_strided_slice %469 {offsets = [0, 64], sizes = [8, 64], strides = [1, 1]} : vector<8x256xf32> to vector<8x64xf32>
    %477 = arith.negf %476 : vector<8x64xf32>
    %478 = math.exp %477 : vector<8x64xf32>
    %cst_133 = arith.constant 1.000000e+00 : f32
    %479 = vector.broadcast %cst_133 : f32 to vector<8x64xf32>
    %480 = arith.addf %479, %478 : vector<8x64xf32>
    %481 = arith.divf %479, %480 : vector<8x64xf32>
    %482 = vector.extract_strided_slice %469 {offsets = [0, 128], sizes = [8, 64], strides = [1, 1]} : vector<8x256xf32> to vector<8x64xf32>
    %483 = math.tanh %482 : vector<8x64xf32>
    %484 = vector.extract_strided_slice %469 {offsets = [0, 192], sizes = [8, 64], strides = [1, 1]} : vector<8x256xf32> to vector<8x64xf32>
    %485 = arith.negf %484 : vector<8x64xf32>
    %486 = math.exp %485 : vector<8x64xf32>
    %cst_134 = arith.constant 1.000000e+00 : f32
    %487 = vector.broadcast %cst_134 : f32 to vector<8x64xf32>
    %488 = arith.addf %487, %486 : vector<8x64xf32>
    %489 = arith.divf %487, %488 : vector<8x64xf32>
    %490 = arith.mulf %481, %423 : vector<8x64xf32>
    %491 = arith.mulf %475, %483 : vector<8x64xf32>
    %492 = arith.addf %490, %491 : vector<8x64xf32>
    %493 = math.tanh %492 : vector<8x64xf32>
    %494 = arith.mulf %489, %493 : vector<8x64xf32>
    %495 = arith.index_cast %c6_i32 : i32 to index
    %c0_135 = arith.constant 0 : index
    %c0_136 = arith.constant 0 : index
    %496 = vector.load %arg11[%495, %c0_135, %c0_136] : memref<8x8x128xf32, #tpu.memory_space<vmem>>, vector<1x8x64xf32>
    %497 = vector.shape_cast %496 : vector<1x8x64xf32> to vector<8x64xf32>
    %498 = vector.shape_cast %464 : vector<8x64xf32> to vector<1x8x64xf32>
    tpu.vector_store %arg11[%495, %c0_135, %c0_136], %498 {strides = array<i32>} : memref<8x8x128xf32, #tpu.memory_space<vmem>>, vector<1x8x64xf32>,
    %499 = arith.index_cast %434 : i32 to index
    %c0_137 = arith.constant 0 : index
    %c64_138 = arith.constant 64 : index
    %500 = vector.load %arg11[%499, %c0_137, %c64_138] : memref<8x8x128xf32, #tpu.memory_space<vmem>>, vector<1x8x64xf32>
    %501 = vector.shape_cast %500 : vector<1x8x64xf32> to vector<8x64xf32>
    %502 = vector.shape_cast %494 : vector<8x64xf32> to vector<1x8x64xf32>
    tpu.vector_store %arg11[%499, %c0_137, %c64_138], %502 {strides = array<i32>} : memref<8x8x128xf32, #tpu.memory_space<vmem>>, vector<1x8x64xf32>,
    %c7_i32_139 = arith.constant 7 : i32
    %c7_i32_140 = arith.constant 7 : i32
    %503 = arith.subi %c7_i32_140, %c7_i32_139 : i32
    %504 = arith.index_cast %c7_i32_139 : i32 to index
    %c0_141 = arith.constant 0 : index
    %c0_142 = arith.constant 0 : index
    %505 = vector.load %arg12[%504, %c0_141, %c0_142] : memref<8x8x256xf32, #tpu.memory_space<vmem>>, vector<1x8x256xf32>
    %506 = vector.shape_cast %505 : vector<1x8x256xf32> to vector<8x256xf32>
    %cst_143 = arith.constant dense<0.000000e+00> : vector<8x256xf32>
    %507 = tpu.matmul %464, %17, %cst_143 {dimension_numbers = #tpu.dot_dimension_numbers<[1], [0], [0], [1], [0, 0, 1, 1], [], []>} : vector<8x64xf32>, vector<64x256xf32>, vector<8x256xf32> -> vector<8x256xf32>
    %508 = arith.addf %506, %507 : vector<8x256xf32>
    %509 = vector.extract_strided_slice %508 {offsets = [0, 0], sizes = [8, 64], strides = [1, 1]} : vector<8x256xf32> to vector<8x64xf32>
    %510 = arith.negf %509 : vector<8x64xf32>
    %511 = math.exp %510 : vector<8x64xf32>
    %cst_144 = arith.constant 1.000000e+00 : f32
    %512 = vector.broadcast %cst_144 : f32 to vector<8x64xf32>
    %513 = arith.addf %512, %511 : vector<8x64xf32>
    %514 = arith.divf %512, %513 : vector<8x64xf32>
    %515 = vector.extract_strided_slice %508 {offsets = [0, 64], sizes = [8, 64], strides = [1, 1]} : vector<8x256xf32> to vector<8x64xf32>
    %516 = arith.negf %515 : vector<8x64xf32>
    %517 = math.exp %516 : vector<8x64xf32>
    %cst_145 = arith.constant 1.000000e+00 : f32
    %518 = vector.broadcast %cst_145 : f32 to vector<8x64xf32>
    %519 = arith.addf %518, %517 : vector<8x64xf32>
    %520 = arith.divf %518, %519 : vector<8x64xf32>
    %521 = vector.extract_strided_slice %508 {offsets = [0, 128], sizes = [8, 64], strides = [1, 1]} : vector<8x256xf32> to vector<8x64xf32>
    %522 = math.tanh %521 : vector<8x64xf32>
    %523 = vector.extract_strided_slice %508 {offsets = [0, 192], sizes = [8, 64], strides = [1, 1]} : vector<8x256xf32> to vector<8x64xf32>
    %524 = arith.negf %523 : vector<8x64xf32>
    %525 = math.exp %524 : vector<8x64xf32>
    %cst_146 = arith.constant 1.000000e+00 : f32
    %526 = vector.broadcast %cst_146 : f32 to vector<8x64xf32>
    %527 = arith.addf %526, %525 : vector<8x64xf32>
    %528 = arith.divf %526, %527 : vector<8x64xf32>
    %529 = arith.mulf %520, %462 : vector<8x64xf32>
    %530 = arith.mulf %514, %522 : vector<8x64xf32>
    %531 = arith.addf %529, %530 : vector<8x64xf32>
    %532 = math.tanh %531 : vector<8x64xf32>
    %533 = arith.mulf %528, %532 : vector<8x64xf32>
    %534 = arith.index_cast %503 : i32 to index
    %c0_147 = arith.constant 0 : index
    %c0_148 = arith.constant 0 : index
    %535 = vector.load %arg13[%534, %c0_147, %c0_148] : memref<8x8x256xf32, #tpu.memory_space<vmem>>, vector<1x8x256xf32>
    %536 = vector.shape_cast %535 : vector<1x8x256xf32> to vector<8x256xf32>
    %cst_149 = arith.constant dense<0.000000e+00> : vector<8x256xf32>
    %537 = tpu.matmul %494, %18, %cst_149 {dimension_numbers = #tpu.dot_dimension_numbers<[1], [0], [0], [1], [0, 0, 1, 1], [], []>} : vector<8x64xf32>, vector<64x256xf32>, vector<8x256xf32> -> vector<8x256xf32>
    %538 = arith.addf %536, %537 : vector<8x256xf32>
    %539 = vector.extract_strided_slice %538 {offsets = [0, 0], sizes = [8, 64], strides = [1, 1]} : vector<8x256xf32> to vector<8x64xf32>
    %540 = arith.negf %539 : vector<8x64xf32>
    %541 = math.exp %540 : vector<8x64xf32>
    %cst_150 = arith.constant 1.000000e+00 : f32
    %542 = vector.broadcast %cst_150 : f32 to vector<8x64xf32>
    %543 = arith.addf %542, %541 : vector<8x64xf32>
    %544 = arith.divf %542, %543 : vector<8x64xf32>
    %545 = vector.extract_strided_slice %538 {offsets = [0, 64], sizes = [8, 64], strides = [1, 1]} : vector<8x256xf32> to vector<8x64xf32>
    %546 = arith.negf %545 : vector<8x64xf32>
    %547 = math.exp %546 : vector<8x64xf32>
    %cst_151 = arith.constant 1.000000e+00 : f32
    %548 = vector.broadcast %cst_151 : f32 to vector<8x64xf32>
    %549 = arith.addf %548, %547 : vector<8x64xf32>
    %550 = arith.divf %548, %549 : vector<8x64xf32>
    %551 = vector.extract_strided_slice %538 {offsets = [0, 128], sizes = [8, 64], strides = [1, 1]} : vector<8x256xf32> to vector<8x64xf32>
    %552 = math.tanh %551 : vector<8x64xf32>
    %553 = vector.extract_strided_slice %538 {offsets = [0, 192], sizes = [8, 64], strides = [1, 1]} : vector<8x256xf32> to vector<8x64xf32>
    %554 = arith.negf %553 : vector<8x64xf32>
    %555 = math.exp %554 : vector<8x64xf32>
    %cst_152 = arith.constant 1.000000e+00 : f32
    %556 = vector.broadcast %cst_152 : f32 to vector<8x64xf32>
    %557 = arith.addf %556, %555 : vector<8x64xf32>
    %558 = arith.divf %556, %557 : vector<8x64xf32>
    %559 = arith.mulf %550, %492 : vector<8x64xf32>
    %560 = arith.mulf %544, %552 : vector<8x64xf32>
    %561 = arith.addf %559, %560 : vector<8x64xf32>
    %562 = math.tanh %561 : vector<8x64xf32>
    %563 = arith.mulf %558, %562 : vector<8x64xf32>
    %564 = arith.index_cast %c7_i32_139 : i32 to index
    %c0_153 = arith.constant 0 : index
    %c0_154 = arith.constant 0 : index
    %565 = vector.load %arg11[%564, %c0_153, %c0_154] : memref<8x8x128xf32, #tpu.memory_space<vmem>>, vector<1x8x64xf32>
    %566 = vector.shape_cast %565 : vector<1x8x64xf32> to vector<8x64xf32>
    %567 = vector.shape_cast %533 : vector<8x64xf32> to vector<1x8x64xf32>
    tpu.vector_store %arg11[%564, %c0_153, %c0_154], %567 {strides = array<i32>} : memref<8x8x128xf32, #tpu.memory_space<vmem>>, vector<1x8x64xf32>,
    %568 = arith.index_cast %503 : i32 to index
    %c0_155 = arith.constant 0 : index
    %c64_156 = arith.constant 64 : index
    %569 = vector.load %arg11[%568, %c0_155, %c64_156] : memref<8x8x128xf32, #tpu.memory_space<vmem>>, vector<1x8x64xf32>
    %570 = vector.shape_cast %569 : vector<1x8x64xf32> to vector<8x64xf32>
    %571 = vector.shape_cast %563 : vector<8x64xf32> to vector<1x8x64xf32>
    tpu.vector_store %arg11[%568, %c0_155, %c64_156], %571 {strides = array<i32>} : memref<8x8x128xf32, #tpu.memory_space<vmem>>, vector<1x8x64xf32>,
    %c8_i32 = arith.constant 8 : i32
    %c0_157 = arith.constant 0 : index
    %c0_158 = arith.constant 0 : index
    %c0_159 = arith.constant 0 : index
    %572 = vector.load %arg11[%c0_157, %c0_158, %c0_159] : memref<8x8x128xf32, #tpu.memory_space<vmem>>, vector<8x8x128xf32>
    %573 = vector.shape_cast %572 : vector<8x8x128xf32> to vector<64x128xf32>
    %574 = arith.truncf %573 : vector<64x128xf32> to vector<64x128xbf16>
    %c0_160 = arith.constant 0 : index
    %c0_161 = arith.constant 0 : index
    %575 = vector.load %arg8[%c0_160, %c0_161] : memref<128x128xbf16, #tpu.memory_space<vmem>>, vector<128x128xbf16>
    %cst_162 = arith.constant dense<0.000000e+00> : vector<64x128xf32>
    %576 = tpu.matmul %574, %575, %cst_162 {dimension_numbers = #tpu.dot_dimension_numbers<[1], [0], [0], [1], [0, 0, 1, 1], [], []>} : vector<64x128xbf16>, vector<128x128xbf16>, vector<64x128xf32> -> vector<64x128xf32>
    %577 = vector.shape_cast %576 : vector<64x128xf32> to vector<8x8x128xf32>
    %c0_163 = arith.constant 0 : index
    %c0_164 = arith.constant 0 : index
    %578 = vector.load %arg9[%c0_163, %c0_164] : memref<1x128xf32, #tpu.memory_space<vmem>>, vector<1x128xf32>
    %579 = vector.shape_cast %578 : vector<1x128xf32> to vector<1x1x128xf32>
    %580 = vector.broadcast %579 : vector<1x1x128xf32> to vector<8x8x128xf32>
    %581 = arith.addf %577, %580 : vector<8x8x128xf32>
    %c0_165 = arith.constant 0 : index
    %c0_166 = arith.constant 0 : index
    %c0_167 = arith.constant 0 : index
    %582 = vector.load %arg10[%c0_165, %c0_166, %c0_167] : memref<8x8x128xf32, #tpu.memory_space<vmem>>, vector<8x8x128xf32>
    tpu.vector_store %arg10[%c0_165, %c0_166, %c0_167], %581 {strides = array<i32>} : memref<8x8x128xf32, #tpu.memory_space<vmem>>, vector<8x8x128xf32>,
    return
  }
  func.func @transform_0(%arg0: i32) -> (i32, i32, i32) {
    %c0_i32 = arith.constant 0 : i32
    %c0_i32_0 = arith.constant 0 : i32
    %c0_i32_1 = arith.constant 0 : i32
    return %c0_i32, %arg0, %c0_i32_0 : i32, i32, i32
  }
  func.func @transform_1(%arg0: i32) -> (i32, i32) {
    %c0_i32 = arith.constant 0 : i32
    %c0_i32_0 = arith.constant 0 : i32
    %c0_i32_1 = arith.constant 0 : i32
    return %c0_i32, %c0_i32_0 : i32, i32
  }
  func.func @transform_2(%arg0: i32) -> (i32, i32) {
    %c0_i32 = arith.constant 0 : i32
    %c0_i32_0 = arith.constant 0 : i32
    %c0_i32_1 = arith.constant 0 : i32
    return %c0_i32, %c0_i32_0 : i32, i32
  }
  func.func @transform_3(%arg0: i32) -> (i32, i32) {
    %c0_i32 = arith.constant 0 : i32
    %c0_i32_0 = arith.constant 0 : i32
    %c0_i32_1 = arith.constant 0 : i32
    return %c0_i32, %c0_i32_0 : i32, i32
  }
  func.func @transform_4(%arg0: i32) -> (i32, i32) {
    %c0_i32 = arith.constant 0 : i32
    %c0_i32_0 = arith.constant 0 : i32
    %c0_i32_1 = arith.constant 0 : i32
    return %c0_i32, %c0_i32_0 : i32, i32
  }
  func.func @transform_5(%arg0: i32) -> (i32, i32) {
    %c0_i32 = arith.constant 0 : i32
    %c0_i32_0 = arith.constant 0 : i32
    %c0_i32_1 = arith.constant 0 : i32
    return %c0_i32, %c0_i32_0 : i32, i32
  }
  func.func @transform_6(%arg0: i32) -> (i32, i32) {
    %c0_i32 = arith.constant 0 : i32
    %c0_i32_0 = arith.constant 0 : i32
    %c0_i32_1 = arith.constant 0 : i32
    return %c0_i32, %c0_i32_0 : i32, i32
  }
  func.func @transform_7(%arg0: i32) -> (i32, i32) {
    %c0_i32 = arith.constant 0 : i32
    %c0_i32_0 = arith.constant 0 : i32
    %c0_i32_1 = arith.constant 0 : i32
    return %c0_i32, %c0_i32_0 : i32, i32
  }
  func.func @transform_8(%arg0: i32) -> (i32, i32) {
    %c0_i32 = arith.constant 0 : i32
    %c0_i32_0 = arith.constant 0 : i32
    %c0_i32_1 = arith.constant 0 : i32
    return %c0_i32, %c0_i32_0 : i32, i32
  }
  func.func @transform_9(%arg0: i32) -> (i32, i32, i32) {
    %c0_i32 = arith.constant 0 : i32
    %c0_i32_0 = arith.constant 0 : i32
    %c0_i32_1 = arith.constant 0 : i32
    return %c0_i32, %arg0, %c0_i32_0 : i32, i32, i32
  }
  func.func @transform_10(%arg0: i32) -> (i32, i32, i32) {
    %c0_i32 = arith.constant 0 : i32
    %c0_i32_0 = arith.constant 0 : i32
    %c0_i32_1 = arith.constant 0 : i32
    return %c0_i32, %arg0, %c0_i32_0 : i32, i32, i32
  }
}

</mosaic_0001>

<bundles_post_ra>
// kernel: bilstm_tagger_forward.1
= control target key start
LH: loop header
LB: loop body
LE: loop exit
PB: predicated region body
PF: predicated region fallthrough
CT: control target
= control target key end

     0   :  { %v2525_v1 = vmov 0   ;;  %vm71_vm0 = vcmask 130048   ;;  %v3582_v31 = vmov 0.0   ;;  %v51_v50 = vlaneseq  ;;  %s3571_s1 = inlined_call_operand.vmem [shape: bf16[16,256], index: 1, kind: input, shape index: {}]   ;;  %s3572_s0 = inlined_call_operand.vmem [shape: f32[8,8,16], index: 0, kind: input, shape index: {}]   ;;  %s3573_s2 = inlined_call_operand.vmem [shape: f32[64,256], index: 2, kind: input, shape index: {}]   ;;  %s3574_s4 = inlined_call_operand.vmem [shape: bf16[16,256], index: 4, kind: input, shape index: {}]   ;;  %s3575_s5 = inlined_call_operand.vmem [shape: f32[64,256], index: 5, kind: input, shape index: {}]   ;;  %s3576_s3 = inlined_call_operand.vmem [shape: f32[1,256], index: 3, kind: input, shape index: {}]   ;;  %s3577_s6 = inlined_call_operand.vmem [shape: f32[1,256], index: 6, kind: input, shape index: {}]   ;;  %s3578_s10 = inlined_call_operand.vmem [shape: f32[8,8,128], index: 10, kind: output, shape index: {1}]   ;;  %s3579_s7 = inlined_call_operand.vmem [shape: bf16[128,128], index: 7, kind: input, shape index: {}]   ;;  %s3580_s8 = inlined_call_operand.vmem [shape: f32[1,128], index: 8, kind: input, shape index: {}]   ;;  %s3581_s9 = inlined_call_operand.vmem [shape: f32[8,8,128], index: 9, kind: output, shape index: {0}]  }
   0x1   :  { %v2287_v0 = vld [vmem:[%s3571_s1 + $0x4] ss:$8 sps:$4 sm:$0xff]   ;;  %116 = vmatprep.mubr.bf16.mxu0 %v2525_v1  ;;  %136 = vmatprep.mubr.bf16.mxu1 %v2525_v1  ;;  %v2289_v2 = vld [vmem:[%s3571_s1] ss:$8 sps:$4 sm:$0xff]   ;;  %v2608_v8 = vld [vmem:[%s3573_s2 + $0x78] sm:$0xff]  ;;  %vm523_vm1 = vcmask 1048064  }
   0x2   :  { %v35_v3 = vld [vmem:[%s3572_s0] sm:$0xff]  ;;  %v36_v4 = vld [vmem:[%s3572_s0 + $0x8] sm:$0xff]  ;;  %98 = vmatprep.subr.bf16.mxu0 %v2287_v0  ;;  %2282 = vmatprep.subr.bf16.mxu1 %v2287_v0  ;;  %v2616_v10 = vld [vmem:[%s3573_s2 + $0x70] sm:$0xff]  ;;  %v52_v51 = vshrl.u32 %v51_v50, 7  ;;  %vm320_vm2 = vcmask 523264  }
   0x3   :  { %v2597_v5 = vpack.c.bf16 %v36_v4, %v35_v3  ;;  %v39_v6 = vld [vmem:[%s3572_s0 + $0x20] sm:$0xff]  ;;  %v40_v7 = vld [vmem:[%s3572_s0 + $0x28] sm:$0xff]  ;;  %99 = vmatpush1.bf16.msra.mxu0 %v2289_v2  ;;  %2283 = vmatpush1.bf16.msra.mxu1 %v2289_v2  ;;  %v2635_v13 = vld [vmem:[%s3573_s2 + $0x58] sm:$0xff] }
   0x4   :  { %v2610_v9 = vpack.c.bf16 %v40_v7, %v39_v6  ;;  %340 = vmatprep.subr.mxu0 %v2608_v8  ;;  %v2621_v11 = vld [vmem:[%s3573_s2 + $0x68] sm:$0xff]  ;;  %v2626_v12 = vld [vmem:[%s3573_s2 + $0x60] sm:$0xff]  ;;  %v2640_v14 = vld [vmem:[%s3573_s2 + $0x50] sm:$0xff]  ;;  %v53_v52 = vsub.s32 0, %v52_v51  ;;  %v57_v54 = vsub.s32 1, %v52_v51 }
   0x5   :  { %v37_v15 = vld [vmem:[%s3572_s0 + $0x10] sm:$0xff]  ;;  %v38_v16 = vld [vmem:[%s3572_s0 + $0x18] sm:$0xff]  ;;  %v2290_v19 = vld [vmem:[%s3574_s4] ss:$8 sps:$4 sm:$0xff]  }
   0x6   :  { %2167 = vmatmul.mubr.msk.bf16.vlgmr.msra.gmra.mxu0 %vm71_vm0, %v2597_v5  ;;  %2169 = vmatmul.mubr.msk.bf16.vlgmr.msra.gmra.mxu1 %vm71_vm0, %v2610_v9  ;;  %v41_v17 = vld [vmem:[%s3572_s0 + $0x30] sm:$0xff]  ;;  %v42_v18 = vld [vmem:[%s3572_s0 + $0x38] sm:$0xff]  ;;  %v2665_v20 = vld [vmem:[%s3573_s2 + $0x48] sm:$0xff]  ;;  %v44_v23 = vpack.c.bf16 %v38_v16, %v37_v15 }
   0x7   :  { %341 = vmatpush1.msra.mxu0 %v2616_v10  ;;  %126 = vmatprep.mubr.bf16.mxu0 %v2525_v1  ;;  %v2292_v21 = vld [vmem:[%s3574_s4 + $0x4] ss:$8 sps:$4 sm:$0xff]   ;;  %v2676_v24 = vpack.c.bf16 %v42_v18, %v41_v17  ;;  %v2681_v25 = vld [vmem:[%s3575_s5 + $0x78] sm:$0xff]  ;;  %v2694_v27 = vld [vmem:[%s3573_s2 + $0x30] sm:$0xff] }
   0x8   :  { %342 = vmatprep.subr.mxu0 %v2621_v11  ;;  %146 = vmatprep.mubr.bf16.mxu1 %v2525_v1  ;;  %v2674_v22 = vld [vmem:[%s3573_s2 + $0x40] sm:$0xff]  ;;  %v2688_v26 = vld [vmem:[%s3573_s2 + $0x38] sm:$0xff]  ;;  %v2703_v28 = vld [vmem:[%s3573_s2 + $0x28] sm:$0xff] }
   0x9   :  { %343 = vmatpush1.msra.mxu0 %v2626_v12  ;;  %211 = vmatprep.subr.bf16.mxu1 %v2292_v21  ;;  %v2709_v29 = vld [vmem:[%s3573_s2 + $0x20] sm:$0xff]  ;;  %v2716_v30 = vld [vmem:[%s3573_s2 + $0x18] sm:$0xff]  ;;  %v2723_v32 = vld [vmem:[%s3573_s2 + $0x10] sm:$0xff] }
   0xa   :  { %344 = vmatprep.subr.mxu0 %v2635_v13  ;;  %212 = vmatpush1.bf16.msra.mxu1 %v2290_v19  ;;  %v2729_v33 = vld [vmem:[%s3573_s2 + $0x8] sm:$0xff]  ;;  %v2735_v34 = vld [vmem:[%s3573_s2] sm:$0xff]  ;;  %v2742_v35 = vld [vmem:[%s3575_s5 + $0x70] sm:$0xff] }
   0xb   :  { %345 = vmatpush1.msra.mxu0 %v2640_v14  ;;  %438 = vmatprep.subr.mxu1 %v2681_v25  ;;  %v2750_v36 = vld [vmem:[%s3575_s5 + $0x68] sm:$0xff]  ;;  %v2757_v37 = vld [vmem:[%s3575_s5 + $0x60] sm:$0xff]  ;;  %v2763_v38 = vld [vmem:[%s3575_s5 + $0x58] sm:$0xff] }
   0xc   :  { %346 = vmatprep.subr.mxu0 %v2665_v20  ;;  %v2770_v39 = vld [vmem:[%s3575_s5 + $0x50] sm:$0xff]  ;;  %v2777_v40 = vld [vmem:[%s3575_s5 + $0x48] sm:$0xff]  ;;  %v2786_v41 = vld [vmem:[%s3575_s5 + $0x40] sm:$0xff] }
   0xd   :  { %347 = vmatpush1.msra.mxu0 %v2674_v22  ;;  %v2793_v42 = vld [vmem:[%s3575_s5 + $0x38] sm:$0xff]  ;;  %v2800_v43 = vld [vmem:[%s3575_s5 + $0x30] sm:$0xff]  ;;  %v2808_v44 = vld [vmem:[%s3575_s5 + $0x28] sm:$0xff] }
   0xe   :  { %2168 = vmatmul.mubr.msk.bf16.gmra.mxu0 %vm71_vm0, %v44_v23  ;;  %2170 = vmatmul.mubr.msk.bf16.gmra.mxu1 %vm71_vm0, %v2676_v24  ;;  %v2814_v45 = vld [vmem:[%s3575_s5 + $0x20] sm:$0xff]  ;;  %v2821_v46 = vld [vmem:[%s3575_s5 + $0x18] sm:$0xff]  ;;  %v2828_v47 = vld [vmem:[%s3575_s5 + $0x10] sm:$0xff] }
   0xf   :  { %348 = vmatprep.subr.mxu0 %v2688_v26  ;;  %229 = vmatprep.mubr.bf16.mxu1 %v2525_v1  ;;  %v2835_v48 = vld [vmem:[%s3575_s5 + $0x8] sm:$0xff]  ;;  %v2842_v49 = vld [vmem:[%s3575_s5] sm:$0xff] }
  0x10   :  { %349 = vmatpush1.msra.mxu0 %v2694_v27  ;;  %388 = vmatprep.mubr.f32.mxu0 %v3582_v31  ;;  %v49_v53 = vld [vmem:[%s3576_s3] sm:$0x3] }
  0x11   :  { %350 = vmatprep.subr.mxu0 %v2703_v28  ;;  %v54_v55 = vrot.slane %v49_v53, %v53_v52  ;;  %v58_v59 = vrot.slane %v49_v53, %v57_v54  ;;  %v175_v50 = vld [vmem:[%s3577_s6] sm:$0x3]  ;;  %s2527_s6 = smov 64  }
  0x12   :  { %351 = vmatpush1.msra.mxu0 %v2709_v29 }
  0x13   :  { %352 = vmatprep.subr.mxu0 %v2716_v30 }
  0x14   :  { %353 = vmatpush1.msra.mxu0 %v2723_v32 }
  0x15   :  { %354 = vmatprep.subr.mxu0 %v2729_v33 }
  0x16   :  { %355 = vmatpush1.msra.mxu0 %v2735_v34  ;;  %2173 = vmatmul.mubr.msk.bf16.vlgmr.msra.gmra.mxu1 %vm71_vm0, %v2597_v5 }
  0x17   :  { %389 = vmatmul.mubr.f32.vlgmr.msra.gmra.mxu0 %v3582_v31  ;;  %239 = vmatprep.mubr.bf16.mxu1 %v2525_v1 }
  0x18   :  { %439 = vmatpush1.msra.mxu1 %v2742_v35  ;;  %546 = vmatprep.subr.mxu0 %v2608_v8 }
  0x19   :  { %440 = vmatprep.subr.mxu1 %v2750_v36  ;;  %547 = vmatpush1.msra.mxu0 %v2616_v10 }
  0x1a   :  { %441 = vmatpush1.msra.mxu1 %v2757_v37  ;;  %548 = vmatprep.subr.mxu0 %v2621_v11 }
  0x1b   :  { %442 = vmatprep.subr.mxu1 %v2763_v38  ;;  %549 = vmatpush1.msra.mxu0 %v2626_v12 }
  0x1c   :  { %443 = vmatpush1.msra.mxu1 %v2770_v39  ;;  %550 = vmatprep.subr.mxu0 %v2635_v13 }
  0x1d   :  { %444 = vmatprep.subr.mxu1 %v2777_v40  ;;  %551 = vmatpush1.msra.mxu0 %v2640_v14 }
  0x1e   :  { %2174 = vmatmul.mubr.msk.bf16.gmra.mxu1 %vm71_vm0, %v44_v23  ;;  %552 = vmatprep.subr.mxu0 %v2665_v20 }
  0x1f   :  { %249 = vmatprep.mubr.bf16.mxu1 %v2525_v1  ;;  %445 = vmatpush1.msra.mxu1 %v2786_v41 }
  0x20   :  { %446 = vmatprep.subr.mxu1 %v2793_v42  ;;  %553 = vmatpush1.msra.mxu0 %v2674_v22 }
  0x21   :  { %447 = vmatpush1.msra.mxu1 %v2800_v43  ;;  %554 = vmatprep.subr.mxu0 %v2688_v26 }
  0x22   :  { %448 = vmatprep.subr.mxu1 %v2808_v44  ;;  %555 = vmatpush1.msra.mxu0 %v2694_v27 }
  0x23   :  { %449 = vmatpush1.msra.mxu1 %v2814_v45  ;;  %556 = vmatprep.subr.mxu0 %v2703_v28 }
  0x24   :  { %450 = vmatprep.subr.mxu1 %v2821_v46  ;;  %557 = vmatpush1.msra.mxu0 %v2709_v29 }
  0x25   :  { %451 = vmatpush1.msra.mxu1 %v2828_v47  ;;  %558 = vmatprep.subr.mxu0 %v2716_v30 }
  0x26   :  { %2175 = vmatmul.mubr.msk.bf16.gmra.mxu1 %vm71_vm0, %v2610_v9  ;;  %452 = vmatprep.subr.mxu1 %v2835_v48 }
  0x27   :  { %259 = vmatprep.mubr.bf16.mxu1 %v2525_v1  ;;  %453 = vmatpush1.msra.mxu1 %v2842_v49 }
  0x28   :  { %559 = vmatpush1.msra.mxu0 %v2723_v32  ;;  %594 = vmatprep.mubr.f32.mxu0 %v3582_v31 }
  0x29   :  { %560 = vmatprep.subr.mxu0 %v2729_v33  ;;  %649 = vmatprep.subr.mxu1 %v2681_v25 }
  0x2a   :  { %561 = vmatpush1.msra.mxu0 %v2735_v34 }
  0x2b   :  { %757 = vmatprep.subr.mxu0 %v2608_v8 }
  0x2e   :  { %2176 = vmatmul.mubr.msk.bf16.gmra.mxu1 %vm71_vm0, %v2676_v24 }
  0x2f   :  { %486 = vmatprep.mubr.f32.mxu1 %v3582_v31 }
  0x36   :  { %487 = vmatmul.mubr.f32.vlgmr.msra.gmra.mxu1 %v3582_v31 }
  0x37   :  { %650 = vmatpush1.msra.mxu1 %v2742_v35  ;;  %697 = vmatprep.mubr.f32.mxu1 %v3582_v31 }
  0x38   :  { %651 = vmatprep.subr.mxu1 %v2750_v36 }
  0x39   :  { %652 = vmatpush1.msra.mxu1 %v2757_v37 }
  0x3a   :  { %653 = vmatprep.subr.mxu1 %v2763_v38 }
  0x3b   :  { %654 = vmatpush1.msra.mxu1 %v2770_v39 }
  0x3c   :  { %655 = vmatprep.subr.mxu1 %v2777_v40 }
  0x3d   :  { %656 = vmatpush1.msra.mxu1 %v2786_v41 }
  0x3e   :  { %657 = vmatprep.subr.mxu1 %v2793_v42 }
  0x3f   :  { %658 = vmatpush1.msra.mxu1 %v2800_v43 }
  0x40   :  { %659 = vmatprep.subr.mxu1 %v2808_v44 }
  0x41   :  { %660 = vmatpush1.msra.mxu1 %v2814_v45 }
  0x42   :  { %661 = vmatprep.subr.mxu1 %v2821_v46 }
  0x43   :  { %662 = vmatpush1.msra.mxu1 %v2828_v47 }
  0x44   :  { %663 = vmatprep.subr.mxu1 %v2835_v48 }
  0x45   :  { %664 = vmatpush1.msra.mxu1 %v2842_v49 }
  0x46   :  { %860 = vmatprep.subr.mxu1 %v2681_v25 }
  0xc6   :  { %v118_v56 = vpop.f32.mrf.mxu0  ;;  %v138_v57 = vpop.f32.mrf.mxu1 }
  0xc7   :  { %v2882_v58 = vadd.f32 %v138_v57, %v54_v55 }
  0xc8   :  { %v120_v60 = vpop.f32.mrf.mxu0  ;;  %v140_v61 = vpop.f32.mrf.mxu1 }
  0xc9   :  { %v2884_v62 = vadd.f32 %v140_v61, %v58_v59 }
  0xca   :  { %v122_v63 = vpop.f32.mrf.mxu0  ;;  %v142_v0 = vpop.f32.mrf.mxu1 }
  0xcb   :  { %3584 = vst [vmem:[#allocation4_spill] sm:$0xff] %v2884_v62  ;;  %v2886_v1 = vadd.f32 %v122_v63, %v54_v55  ;;  %v2888_v2 = vadd.f32 %v142_v0, %v54_v55 }
  0xcc   :  { %v124_v3 = vpop.f32.mrf.mxu0  ;;  %v144_v4 = vpop.f32.mrf.mxu1 }
  0xcd   :  { %3585 = vst [vmem:[#allocation5_spill] sm:$0xff] %v2888_v2  ;;  %v2890_v5 = vadd.f32 %v124_v3, %v58_v59  ;;  %v2892_v6 = vadd.f32 %v144_v4, %v58_v59  ;;  %v180_v3 = vrot.slane %v175_v50, %v53_v52  ;;  %v119_v4 = vadd.f32 %v118_v56, %v54_v55 }
  0xce   :  { %v128_v7 = vpop.f32.mrf.mxu0  ;;  %v148_v9 = vpop.f32.mrf.mxu1 }
  0xcf   :  { %3586 = vst [vmem:[#allocation6_spill] sm:$0xff] %v2892_v6  ;;  %v2894_v15 = vadd.f32 %v128_v7, %v54_v55  ;;  %v2896_v16 = vadd.f32 %v148_v9, %v54_v55 }
  0xd0   :  { %v130_v17 = vpop.f32.mrf.mxu0  ;;  %v150_v18 = vpop.f32.mrf.mxu1 }
  0xd1   :  { %3587 = vst [vmem:[#allocation7_spill] sm:$0xff] %v2896_v16  ;;  %v2898_v19 = vadd.f32 %v130_v17, %v58_v59  ;;  %v2900_v21 = vadd.f32 %v150_v18, %v58_v59  ;;  %v184_v18 = vrot.slane %v175_v50, %v57_v54 }
  0xd2   :  { %v132_v23 = vpop.f32.mrf.mxu0  ;;  %v152_v24 = vpop.f32.mrf.mxu1 }
  0xd3   :  { %3588 = vst [vmem:[#allocation8_spill] sm:$0xff] %v2900_v21  ;;  %v2905_v51 = vadd.f32 %v132_v23, %v54_v55  ;;  %v2907_v53 = vadd.f32 %v152_v24, %v54_v55 }
  0xd4   :  { %v134_v57 = vpop.f32.mrf.mxu0  ;;  %v154_v61 = vpop.f32.mrf.mxu1 }
  0xd5   :  { %3589 = vst [vmem:[#allocation9_spill] sm:$0xff] %v2907_v53  ;;  %v2909_v63 = vadd.f32 %v134_v57, %v58_v59  ;;  %v2911_v0 = vadd.f32 %v154_v61, %v58_v59 }
  0xd6   :  { %v231_v7 = vpop.f32.mrf.mxu1 }
  0xd7   :  { %3590 = vst [vmem:[#allocation10_spill] sm:$0xff] %v2911_v0  ;;  %v2913_v9 = vadd.f32 %v231_v7, %v180_v3  ;;  %v390_v17 = vpop.f32.mrf.mxu0 }
  0xd8   :  { %v395_v31 = vadd.f32 %v390_v17, %v119_v4  ;;  %v233_v21 = vpop.f32.mrf.mxu1  ;;  %v121_v4 = vadd.f32 %v120_v60, %v58_v59 }
  0xd9   :  { %3591 = vst [vmem:[#allocation11_spill] sm:$0xff] %v2913_v9  ;;  %v2915_v16 = vadd.f32 %v233_v21, %v184_v18  ;;  %v392_v50 = vpop.f32.mrf.mxu0 }
  0xda   :  { %v2177_v23 = vmul.f32 -1.442695, %v395_v31  ;;  %v235_v24 = vpop.f32.mrf.mxu1 }
  0xdb   :  { %3592 = vst [vmem:[#allocation12_spill] sm:$0xff] %v2915_v16  ;;  %v2917_v53 = vadd.f32 %v235_v24, %v180_v3  ;;  %v396_v24 = vadd.f32 %v392_v50, %v121_v4 }
  0xdc   :  { %2301 = vpow2.f32 %v2177_v23  ;;  %v237_v57 = vpop.f32.mrf.mxu1 }
  0xdd   :  { %3593 = vst [vmem:[#allocation13_spill] sm:$0xff] %v2917_v53  ;;  %v2919_v6 = vadd.f32 %v237_v57, %v184_v18  ;;  %2303 = vtanh.f32 %v396_v24 }
  0xde   :  { %v241_v61 = vpop.f32.mrf.mxu1 }
  0xdf   :  { %3594 = vst [vmem:[#allocation14_spill] sm:$0xff] %v2919_v6  ;;  %v2921_v52 = vadd.f32 %v241_v61, %v180_v3 }
  0xe0   :  { %v243_v55 = vpop.f32.mrf.mxu1 }
  0xe1   :  { %3595 = vst [vmem:[#allocation15_spill] sm:$0xff] %v2921_v52  ;;  %v2923_v56 = vadd.f32 %v243_v55, %v184_v18 }
  0xe2   :  { %v245_v7 = vpop.f32.mrf.mxu1 }
  0xe3   :  { %3596 = vst [vmem:[#allocation16_spill] sm:$0xff] %v2923_v56  ;;  %v2925_v54 = vadd.f32 %v245_v7, %v180_v3 }
  0xe4   :  { %v247_v21 = vpop.f32.mrf.mxu1 }
  0xe5   :  { %3597 = vst [vmem:[#allocation17_spill] sm:$0xff] %v2925_v54  ;;  %v2927_v31 = vadd.f32 %v247_v21, %v184_v18 }
  0xe6   :  { %v251_v17 = vpop.f32.mrf.mxu1 }
  0xe7   :  { %3598 = vst [vmem:[#allocation18_spill] sm:$0xff] %v2927_v31  ;;  %v2929_v23 = vadd.f32 %v251_v17, %v180_v3 }
  0xe8   :  { %v253_v57 = vpop.f32.mrf.mxu1 }
  0xe9   :  { %v2302_v16 = vpop.eup %2301  ;;  %v2931_v9 = vadd.f32 %v253_v57, %v184_v18 }
  0xea   :  { %v400_v61 = vadd.f32 1.0, %v2302_v16  ;;  %v255_v0 = vpop.f32.mrf.mxu1  ;;  %v2304_v16 = vpop.eup %2303 }
  0xeb   :  { %v2933_v55 = vadd.f32 %v255_v0, %v180_v3 }
  0xec   :  { %2305 = vrcp.f32 %v400_v61  ;;  %v257_v7 = vpop.f32.mrf.mxu1 }
  0xed   :  { %v2935_v6 = vadd.f32 %v257_v7, %v184_v18 }
  0xee   :  { %v261_v59 = vpop.f32.mrf.mxu1 }
  0xef   :  { %v2937_v60 = vadd.f32 %v261_v59, %v180_v3 }
  0xf0   :  { %v263_v21 = vpop.f32.mrf.mxu1 }
  0xf1   :  { %v2939_v50 = vadd.f32 %v263_v21, %v184_v18 }
  0xf2   :  { %v265_v4 = vpop.f32.mrf.mxu1 }
  0xf3   :  { %v266_v17 = vadd.f32 %v265_v4, %v180_v3 }
  0xf4   :  { %v267_v53 = vpop.f32.mrf.mxu1 }
  0xf5   :  { %v268_v61 = vadd.f32 %v267_v53, %v184_v18 }
  0xf6   :  { %v488_v57 = vpop.f32.mrf.mxu1 }
  0xf7   :  { %v493_v56 = vadd.f32 %v488_v57, %v266_v17  ;;  %v2178_v17 = vmul.f32 -1.442695, %v396_v24 }
  0xf8   :  { %v490_v7 = vpop.f32.mrf.mxu1 }
  0xf9   :  { %v2306_v52 = vpop.eup %2305  ;;  %v2179_v2 = vmul.f32 -1.442695, %v493_v56  ;;  %v494_v59 = vadd.f32 %v490_v7, %v268_v61 }
  0xfa   :  { %v411_v0 = vmul.f32 %v2306_v52, %v2304_v16 }
  0xfb   :  { %2307 = vpow2.f32 %v2179_v2  ;;  %v410_v2 = vmul.f32 0.0, %v2306_v52  ;;  %v2180_v53 = vmul.f32 -1.442695, %v494_v59 }
  0xfc   :  { %413 = vrot.lane.b32.xlu0 %v411_v0, %s2527_s6  ;;  %2309 = vtanh.f32 %v494_v59 }
 0x108   :  { %v2308_v31 = vpop.eup %2307 }
 0x109   :  { %v498_v54 = vadd.f32 1.0, %v2308_v31  ;;  %v2310_v21 = vpop.eup %2309 }
 0x10b   :  { %2311 = vrcp.f32 %v498_v54 }
 0x10c   :  { %2313 = vpow2.f32 %v2178_v17 }
 0x118   :  { %v2312_v3 = vpop.eup %2311 }
 0x119   :  { %v509_v4 = vmul.f32 %v2312_v3, %v2310_v21  ;;  %v2314_v56 = vpop.eup %2313  ;;  %v508_v24 = vmul.f32 0.0, %v2312_v3  ;;  %v3599_v3 = vmov 0.0  }
 0x11a   :  { %v407_v57 = vadd.f32 1.0, %v2314_v56 }
 0x11b   :  { %511 = vrot.lane.b32.xlu0 %v509_v4, %s2527_s6 }
 0x11c   :  { %2315 = vrcp.f32 %v407_v57 }
 0x129   :  { %v2316_v18 = vpop.eup %2315 }
 0x16e   :  { %v414_v16 = vpop.permute.xlu0 %413 }
 0x16f   :  { %v2943_v62 = vadd.f32 %v414_v16, %v410_v2 }
 0x171   :  { %2317 = vtanh.f32 %v2943_v62 }
 0x172   :  { %2319 = vpow2.f32 %v2180_v53 }
 0x17e   :  { %v2318_v54 = vpop.eup %2317 }
 0x17f   :  { %v418_v31 = vmul.f32 %v2318_v54, %v2316_v18  ;;  %v2320_v0 = vpop.eup %2319 }
 0x180   :  { %v505_v61 = vadd.f32 1.0, %v2320_v0 }
 0x181   :  { %518 = vrot.lane.b32.xlu1 %v418_v31, %s2527_s6 }
 0x182   :  { %2321 = vrcp.f32 %v505_v61 }
 0x18d   :  { %v512_v7 = vpop.permute.xlu0 %511 }
 0x18e   :  { %v2947_v21 = vadd.f32 %v512_v7, %v508_v24 }
 0x18f   :  { %v2322_v52 = vpop.eup %2321 }
 0x190   :  { %2323 = vtanh.f32 %v2947_v21 }
 0x19d   :  { %v2324_v4 = vpop.eup %2323 }
 0x19e   :  { %v516_v17 = vmul.f32 %v2324_v4, %v2322_v52 }
 0x1a0   :  { %629 = vrot.lane.b32.xlu1 %v516_v17, %s2527_s6  ;;  %2181 = vst.msk [vmem:[%s3578_s10 + $0x38] sm:$0xff] %vm523_vm1, %v516_v17 }
 0x1f3   :  { %v519_v59 = vpop.permute.xlu1 %518 }
 0x1f4   :  { %521 = vst.msk [vmem:[%s3578_s10] sm:$0xff] %vm320_vm2, %v519_v59  ;;  %2182 = vmatmul.mubr.msk.f32.vlgmr.msra.gmra.mxu0 %vm320_vm2, %v519_v59 }
 0x1f5   :  { %758 = vmatpush1.msra.mxu0 %v2616_v10  ;;  %805 = vmatprep.mubr.f32.mxu0 %v3599_v3 }
 0x1f6   :  { %759 = vmatprep.subr.mxu0 %v2621_v11 }
 0x1f7   :  { %760 = vmatpush1.msra.mxu0 %v2626_v12 }
 0x1f8   :  { %761 = vmatprep.subr.mxu0 %v2635_v13 }
 0x1f9   :  { %762 = vmatpush1.msra.mxu0 %v2640_v14 }
 0x1fa   :  { %763 = vmatprep.subr.mxu0 %v2665_v20 }
 0x1fb   :  { %764 = vmatpush1.msra.mxu0 %v2674_v22 }
 0x1fc   :  { %765 = vmatprep.subr.mxu0 %v2688_v26 }
 0x1fd   :  { %766 = vmatpush1.msra.mxu0 %v2694_v27 }
 0x1fe   :  { %767 = vmatprep.subr.mxu0 %v2703_v28 }
 0x1ff   :  { %768 = vmatpush1.msra.mxu0 %v2709_v29 }
 0x200   :  { %769 = vmatprep.subr.mxu0 %v2716_v30 }
 0x201   :  { %770 = vmatpush1.msra.mxu0 %v2723_v32 }
 0x202   :  { %771 = vmatprep.subr.mxu0 %v2729_v33 }
 0x203   :  { %772 = vmatpush1.msra.mxu0 %v2735_v34 }
 0x204   :  { %968 = vmatprep.subr.mxu0 %v2608_v8 }
 0x212   :  { %v630_v56 = vpop.permute.xlu1 %629 }
 0x213   :  { %2185 = vmatmul.mubr.msk.f32.vlgmr.msra.gmra.mxu1 %vm320_vm2, %v630_v56 }
 0x214   :  { %861 = vmatpush1.msra.mxu1 %v2742_v35  ;;  %908 = vmatprep.mubr.f32.mxu1 %v3599_v3 }
 0x215   :  { %862 = vmatprep.subr.mxu1 %v2750_v36 }
 0x216   :  { %863 = vmatpush1.msra.mxu1 %v2757_v37 }
 0x217   :  { %864 = vmatprep.subr.mxu1 %v2763_v38 }
 0x218   :  { %865 = vmatpush1.msra.mxu1 %v2770_v39 }
 0x219   :  { %866 = vmatprep.subr.mxu1 %v2777_v40 }
 0x21a   :  { %867 = vmatpush1.msra.mxu1 %v2786_v41 }
 0x21b   :  { %868 = vmatprep.subr.mxu1 %v2793_v42 }
 0x21c   :  { %869 = vmatpush1.msra.mxu1 %v2800_v43 }
 0x21d   :  { %870 = vmatprep.subr.mxu1 %v2808_v44 }
 0x21e   :  { %871 = vmatpush1.msra.mxu1 %v2814_v45 }
 0x21f   :  { %872 = vmatprep.subr.mxu1 %v2821_v46 }
 0x220   :  { %873 = vmatpush1.msra.mxu1 %v2828_v47 }
 0x221   :  { %874 = vmatprep.subr.mxu1 %v2835_v48 }
 0x222   :  { %875 = vmatpush1.msra.mxu1 %v2842_v49 }
 0x223   :  { %1071 = vmatprep.subr.mxu1 %v2681_v25 }
 0x2b4   :  { %v596_v57 = vpop.f32.mrf.mxu0 }
 0x2b5   :  { %v601_v2 = vadd.f32 %v596_v57, %v2886_v1 }
 0x2b6   :  { %v598_v53 = vpop.f32.mrf.mxu0 }
 0x2b7   :  { %v2183_v16 = vmul.f32 -1.442695, %v601_v2  ;;  %v602_v18 = vadd.f32 %v598_v53, %v2890_v5 }
 0x2b9   :  { %2325 = vpow2.f32 %v2183_v16 }
 0x2ba   :  { %2327 = vtanh.f32 %v602_v18 }
 0x2c6   :  { %v2326_v54 = vpop.eup %2325 }
 0x2c7   :  { %v606_v31 = vadd.f32 1.0, %v2326_v54  ;;  %v2328_v24 = vpop.eup %2327 }
 0x2c9   :  { %2329 = vrcp.f32 %v606_v31 }
 0x2d3   :  { %v699_v0 = vpop.f32.mrf.mxu1 }
 0x2d4   :  { %v704_v61 = vadd.f32 %v699_v0, %v2937_v60  ;;  %v2184_v60 = vmul.f32 -1.442695, %v602_v18 }
 0x2d5   :  { %v701_v1 = vpop.f32.mrf.mxu1 }
 0x2d6   :  { %v2330_v7 = vpop.eup %2329  ;;  %v2186_v52 = vmul.f32 -1.442695, %v704_v61  ;;  %v705_v17 = vadd.f32 %v701_v1, %v2939_v50 }
 0x2d7   :  { %v617_v4 = vmul.f32 %v2330_v7, %v2328_v24  ;;  %v616_v54 = vmul.f32 %v2330_v7, %v2943_v62 }
 0x2d8   :  { %2331 = vpow2.f32 %v2186_v52  ;;  %v2187_v50 = vmul.f32 -1.442695, %v705_v17 }
 0x2d9   :  { %619 = vrot.lane.b32.xlu0 %v617_v4, %s2527_s6  ;;  %2333 = vtanh.f32 %v705_v17 }
 0x2e5   :  { %v2332_v59 = vpop.eup %2331 }
 0x2e6   :  { %v709_v56 = vadd.f32 1.0, %v2332_v59  ;;  %v2334_v5 = vpop.eup %2333 }
 0x2e8   :  { %2335 = vrcp.f32 %v709_v56 }
 0x2e9   :  { %2337 = vpow2.f32 %v2184_v60 }
 0x2f5   :  { %v2336_v57 = vpop.eup %2335 }
 0x2f6   :  { %v720_v2 = vmul.f32 %v2336_v57, %v2334_v5  ;;  %v2338_v16 = vpop.eup %2337  ;;  %v719_v1 = vmul.f32 %v2336_v57, %v2947_v21 }
 0x2f7   :  { %v613_v53 = vadd.f32 1.0, %v2338_v16 }
 0x2f8   :  { %722 = vrot.lane.b32.xlu1 %v720_v2, %s2527_s6 }
 0x2f9   :  { %2339 = vrcp.f32 %v613_v53 }
 0x306   :  { %v2340_v61 = vpop.eup %2339 }
 0x34b   :  { %v620_v31 = vpop.permute.xlu0 %619 }
 0x34c   :  { %v3002_v0 = vadd.f32 %v620_v31, %v616_v54 }
 0x34e   :  { %2341 = vtanh.f32 %v3002_v0 }
 0x34f   :  { %2343 = vpow2.f32 %v2187_v50 }
 0x35b   :  { %v2342_v24 = vpop.eup %2341 }
 0x35c   :  { %v624_v52 = vmul.f32 %v2342_v24, %v2340_v61  ;;  %v2344_v4 = vpop.eup %2343 }
 0x35d   :  { %v716_v18 = vadd.f32 1.0, %v2344_v4 }
 0x35e   :  { %729 = vrot.lane.b32.xlu0 %v624_v52, %s2527_s6 }
 0x35f   :  { %2345 = vrcp.f32 %v716_v18 }
 0x36a   :  { %v723_v59 = vpop.permute.xlu1 %722 }
 0x36b   :  { %v3007_v56 = vadd.f32 %v723_v59, %v719_v1 }
 0x36c   :  { %v2346_v62 = vpop.eup %2345 }
 0x36d   :  { %2347 = vtanh.f32 %v3007_v56 }
 0x37a   :  { %v2348_v7 = vpop.eup %2347 }
 0x37b   :  { %v727_v5 = vmul.f32 %v2348_v7, %v2346_v62 }
 0x37d   :  { %840 = vrot.lane.b32.xlu1 %v727_v5, %s2527_s6  ;;  %2189 = vst.msk [vmem:[%s3578_s10 + $0x30] sm:$0xff] %vm523_vm1, %v727_v5 }
 0x3d0   :  { %v730_v17 = vpop.permute.xlu0 %729 }
 0x3d1   :  { %2188 = vst.msk [vmem:[%s3578_s10 + $0x8] sm:$0xff] %vm320_vm2, %v730_v17  ;;  %2190 = vmatmul.mubr.msk.f32.vlgmr.msra.gmra.mxu0 %vm320_vm2, %v730_v17 }
 0x3d2   :  { %969 = vmatpush1.msra.mxu0 %v2616_v10  ;;  %1016 = vmatprep.mubr.f32.mxu0 %v3599_v3 }
 0x3d3   :  { %970 = vmatprep.subr.mxu0 %v2621_v11 }
 0x3d4   :  { %971 = vmatpush1.msra.mxu0 %v2626_v12 }
 0x3d5   :  { %972 = vmatprep.subr.mxu0 %v2635_v13 }
 0x3d6   :  { %973 = vmatpush1.msra.mxu0 %v2640_v14 }
 0x3d7   :  { %974 = vmatprep.subr.mxu0 %v2665_v20 }
 0x3d8   :  { %975 = vmatpush1.msra.mxu0 %v2674_v22 }
 0x3d9   :  { %976 = vmatprep.subr.mxu0 %v2688_v26 }
 0x3da   :  { %977 = vmatpush1.msra.mxu0 %v2694_v27 }
 0x3db   :  { %978 = vmatprep.subr.mxu0 %v2703_v28 }
 0x3dc   :  { %979 = vmatpush1.msra.mxu0 %v2709_v29 }
 0x3dd   :  { %980 = vmatprep.subr.mxu0 %v2716_v30 }
 0x3de   :  { %981 = vmatpush1.msra.mxu0 %v2723_v32 }
 0x3df   :  { %982 = vmatprep.subr.mxu0 %v2729_v33 }
 0x3e0   :  { %983 = vmatpush1.msra.mxu0 %v2735_v34 }
 0x3e1   :  { %1179 = vmatprep.subr.mxu0 %v2608_v8 }
 0x3ef   :  { %v841_v21 = vpop.permute.xlu1 %840 }
 0x3f0   :  { %2193 = vmatmul.mubr.msk.f32.vlgmr.msra.gmra.mxu1 %vm320_vm2, %v841_v21 }
 0x3f1   :  { %1072 = vmatpush1.msra.mxu1 %v2742_v35  ;;  %1119 = vmatprep.mubr.f32.mxu1 %v3599_v3 }
 0x3f2   :  { %1073 = vmatprep.subr.mxu1 %v2750_v36 }
 0x3f3   :  { %1074 = vmatpush1.msra.mxu1 %v2757_v37 }
 0x3f4   :  { %1075 = vmatprep.subr.mxu1 %v2763_v38 }
 0x3f5   :  { %1076 = vmatpush1.msra.mxu1 %v2770_v39 }
 0x3f6   :  { %1077 = vmatprep.subr.mxu1 %v2777_v40 }
 0x3f7   :  { %1078 = vmatpush1.msra.mxu1 %v2786_v41 }
 0x3f8   :  { %1079 = vmatprep.subr.mxu1 %v2793_v42 }
 0x3f9   :  { %1080 = vmatpush1.msra.mxu1 %v2800_v43 }
 0x3fa   :  { %1081 = vmatprep.subr.mxu1 %v2808_v44 }
 0x3fb   :  { %1082 = vmatpush1.msra.mxu1 %v2814_v45 }
 0x3fc   :  { %1083 = vmatprep.subr.mxu1 %v2821_v46 }
 0x3fd   :  { %1084 = vmatpush1.msra.mxu1 %v2828_v47 }
 0x3fe   :  { %1085 = vmatprep.subr.mxu1 %v2835_v48 }
 0x3ff   :  { %1086 = vmatpush1.msra.mxu1 %v2842_v49 }
 0x400   :  { %1282 = vmatprep.subr.mxu1 %v2681_v25 }
 0x491   :  { %v807_v57 = vpop.f32.mrf.mxu0 }
 0x492   :  { %v812_v2 = vadd.f32 %v807_v57, %v2894_v15 }
 0x493   :  { %v809_v16 = vpop.f32.mrf.mxu0 }
 0x494   :  { %v2191_v60 = vmul.f32 -1.442695, %v812_v2  ;;  %v813_v53 = vadd.f32 %v809_v16, %v2898_v19 }
 0x496   :  { %2349 = vpow2.f32 %v2191_v60 }
 0x497   :  { %2351 = vtanh.f32 %v813_v53 }
 0x4a3   :  { %v2350_v54 = vpop.eup %2349 }
 0x4a4   :  { %v817_v31 = vadd.f32 1.0, %v2350_v54  ;;  %v2352_v24 = vpop.eup %2351 }
 0x4a6   :  { %2353 = vrcp.f32 %v817_v31 }
 0x4b0   :  { %v910_v50 = vpop.f32.mrf.mxu1 }
 0x4b1   :  { %v915_v61 = vadd.f32 %v910_v50, %v2933_v55  ;;  %v2192_v55 = vmul.f32 -1.442695, %v813_v53 }
 0x4b2   :  { %v912_v15 = vpop.f32.mrf.mxu1 }
 0x4b3   :  { %v2354_v52 = vpop.eup %2353  ;;  %v2194_v4 = vmul.f32 -1.442695, %v915_v61  ;;  %v916_v1 = vadd.f32 %v912_v15, %v2935_v6 }
 0x4b4   :  { %v828_v18 = vmul.f32 %v2354_v52, %v2352_v24  ;;  %v827_v57 = vmul.f32 %v2354_v52, %v3002_v0 }
 0x4b5   :  { %2355 = vpow2.f32 %v2194_v4  ;;  %v2195_v6 = vmul.f32 -1.442695, %v916_v1 }
 0x4b6   :  { %830 = vrot.lane.b32.xlu0 %v828_v18, %s2527_s6  ;;  %2357 = vtanh.f32 %v916_v1 }
 0x4c2   :  { %v2356_v59 = vpop.eup %2355 }
 0x4c3   :  { %v920_v62 = vadd.f32 1.0, %v2356_v59  ;;  %v2358_v19 = vpop.eup %2357 }
 0x4c5   :  { %2359 = vrcp.f32 %v920_v62 }
 0x4c6   :  { %2361 = vpow2.f32 %v2192_v55 }
 0x4d2   :  { %v2360_v7 = vpop.eup %2359 }
 0x4d3   :  { %v931_v5 = vmul.f32 %v2360_v7, %v2358_v19  ;;  %v2362_v17 = vpop.eup %2361  ;;  %v930_v61 = vmul.f32 %v2360_v7, %v3007_v56 }
 0x4d4   :  { %v824_v21 = vadd.f32 1.0, %v2362_v17 }
 0x4d5   :  { %933 = vrot.lane.b32.xlu1 %v931_v5, %s2527_s6 }
 0x4d6   :  { %2363 = vrcp.f32 %v824_v21 }
 0x4e3   :  { %v2364_v16 = vpop.eup %2363 }
 0x528   :  { %v831_v2 = vpop.permute.xlu0 %830 }
 0x529   :  { %v3062_v60 = vadd.f32 %v831_v2, %v827_v57 }
 0x52b   :  { %2365 = vtanh.f32 %v3062_v60 }
 0x52c   :  { %2367 = vpow2.f32 %v2195_v6 }
 0x538   :  { %v2366_v54 = vpop.eup %2365 }
 0x539   :  { %v835_v31 = vmul.f32 %v2366_v54, %v2364_v16  ;;  %v2368_v50 = vpop.eup %2367  ;;  %v3143_v54 = vld [vmem:[%s3573_s2 + $0x70] sm:$0xff] }
 0x53a   :  { %v927_v53 = vadd.f32 1.0, %v2368_v50  ;;  %v3156_v50 = vld [vmem:[%s3573_s2 + $0x60] sm:$0xff] }
 0x53b   :  { %940 = vrot.lane.b32.xlu0 %v835_v31, %s2527_s6  ;;  %v3150_v31 = vld [vmem:[%s3573_s2 + $0x68] sm:$0xff] }
 0x53c   :  { %2369 = vrcp.f32 %v927_v53  ;;  %v3162_v53 = vld [vmem:[%s3573_s2 + $0x58] sm:$0xff] }
 0x547   :  { %v934_v24 = vpop.permute.xlu1 %933 }
 0x548   :  { %v3067_v4 = vadd.f32 %v934_v24, %v930_v61  ;;  %v3168_v61 = vld [vmem:[%s3573_s2 + $0x50] sm:$0xff]  ;;  %v3174_v24 = vld [vmem:[%s3573_s2 + $0x48] sm:$0xff] }
 0x549   :  { %v2370_v0 = vpop.eup %2369 }
 0x54a   :  { %2371 = vtanh.f32 %v3067_v4 }
 0x557   :  { %v2372_v52 = vpop.eup %2371 }
 0x558   :  { %v938_v18 = vmul.f32 %v2372_v52, %v2370_v0  ;;  %v3186_v0 = vld [vmem:[%s3573_s2 + $0x38] sm:$0xff]  ;;  %v3192_v52 = vld [vmem:[%s3573_s2 + $0x30] sm:$0xff] }
 0x55a   :  { %1051 = vrot.lane.b32.xlu1 %v938_v18, %s2527_s6  ;;  %2197 = vst.msk [vmem:[%s3578_s10 + $0x28] sm:$0xff] %vm523_vm1, %v938_v18  ;;  %v3198_v18 = vld [vmem:[%s3573_s2 + $0x28] sm:$0xff] }
 0x5ad   :  { %v941_v15 = vpop.permute.xlu0 %940 }
 0x5ae   :  { %2196 = vst.msk [vmem:[%s3578_s10 + $0x10] sm:$0xff] %vm320_vm2, %v941_v15  ;;  %2198 = vmatmul.mubr.msk.f32.vlgmr.msra.gmra.mxu0 %vm320_vm2, %v941_v15  ;;  %v3204_v15 = vld [vmem:[%s3573_s2 + $0x20] sm:$0xff] }
 0x5af   :  { %1180 = vmatpush1.msra.mxu0 %v2616_v10  ;;  %1227 = vmatprep.mubr.f32.mxu0 %v3599_v3 }
 0x5b0   :  { %1181 = vmatprep.subr.mxu0 %v2621_v11 }
 0x5b1   :  { %1182 = vmatpush1.msra.mxu0 %v2626_v12 }
 0x5b2   :  { %1183 = vmatprep.subr.mxu0 %v2635_v13 }
 0x5b3   :  { %1184 = vmatpush1.msra.mxu0 %v2640_v14 }
 0x5b4   :  { %1185 = vmatprep.subr.mxu0 %v2665_v20 }
 0x5b5   :  { %1186 = vmatpush1.msra.mxu0 %v2674_v22 }
 0x5b6   :  { %1187 = vmatprep.subr.mxu0 %v2688_v26 }
 0x5b7   :  { %1188 = vmatpush1.msra.mxu0 %v2694_v27 }
 0x5b8   :  { %1189 = vmatprep.subr.mxu0 %v2703_v28 }
 0x5b9   :  { %1190 = vmatpush1.msra.mxu0 %v2709_v29 }
 0x5ba   :  { %1191 = vmatprep.subr.mxu0 %v2716_v30 }
 0x5bb   :  { %1192 = vmatpush1.msra.mxu0 %v2723_v32 }
 0x5bc   :  { %1193 = vmatprep.subr.mxu0 %v2729_v33 }
 0x5bd   :  { %1194 = vmatpush1.msra.mxu0 %v2735_v34 }
 0x5be   :  { %1388 = vmatprep.subr.mxu0 %v2608_v8 }
 0x5cc   :  { %v1052_v10 = vpop.permute.xlu1 %1051 }
 0x5cd   :  { %2201 = vmatmul.mubr.msk.f32.vlgmr.msra.gmra.mxu1 %vm320_vm2, %v1052_v10  ;;  %v3210_v10 = vld [vmem:[%s3573_s2 + $0x18] sm:$0xff] }
 0x5ce   :  { %1283 = vmatpush1.msra.mxu1 %v2742_v35  ;;  %1330 = vmatprep.mubr.f32.mxu1 %v3599_v3 }
 0x5cf   :  { %1284 = vmatprep.subr.mxu1 %v2750_v36 }
 0x5d0   :  { %1285 = vmatpush1.msra.mxu1 %v2757_v37 }
 0x5d1   :  { %1286 = vmatprep.subr.mxu1 %v2763_v38 }
 0x5d2   :  { %1287 = vmatpush1.msra.mxu1 %v2770_v39 }
 0x5d3   :  { %1288 = vmatprep.subr.mxu1 %v2777_v40 }
 0x5d4   :  { %1289 = vmatpush1.msra.mxu1 %v2786_v41 }
 0x5d5   :  { %1290 = vmatprep.subr.mxu1 %v2793_v42 }
 0x5d6   :  { %1291 = vmatpush1.msra.mxu1 %v2800_v43 }
 0x5d7   :  { %1292 = vmatprep.subr.mxu1 %v2808_v44 }
 0x5d8   :  { %1293 = vmatpush1.msra.mxu1 %v2814_v45 }
 0x5d9   :  { %1294 = vmatprep.subr.mxu1 %v2821_v46 }
 0x5da   :  { %1295 = vmatpush1.msra.mxu1 %v2828_v47 }
 0x5db   :  { %1296 = vmatprep.subr.mxu1 %v2835_v48 }
 0x5dc   :  { %1297 = vmatpush1.msra.mxu1 %v2842_v49 }
 0x5dd   :  { %1491 = vmatprep.subr.mxu1 %v2681_v25 }
 0x66e   :  { %v1018_v8 = vpop.f32.mrf.mxu0 }
 0x66f   :  { %v1023_v11 = vadd.f32 %v1018_v8, %v2905_v51  ;;  %v3216_v8 = vld [vmem:[%s3573_s2 + $0x10] sm:$0xff] }
 0x670   :  { %v1020_v13 = vpop.f32.mrf.mxu0 }
 0x671   :  { %v2199_v12 = vmul.f32 -1.442695, %v1023_v11  ;;  %v1024_v14 = vadd.f32 %v1020_v13, %v2909_v63  ;;  %v3222_v11 = vld [vmem:[%s3573_s2 + $0x8] sm:$0xff]  ;;  %v3234_v13 = vld [vmem:[%s3573_s2 + $0x78] sm:$0xff] }
 0x673   :  { %2373 = vpow2.f32 %v2199_v12  ;;  %v2200_v51 = vmul.f32 -1.442695, %v1024_v14  ;;  %v3228_v12 = vld [vmem:[%s3573_s2] sm:$0xff] }
 0x674   :  { %2375 = vtanh.f32 %v1024_v14 }
 0x680   :  { %v2374_v20 = vpop.eup %2373 }
 0x681   :  { %v1028_v22 = vadd.f32 1.0, %v2374_v20  ;;  %v2376_v28 = vpop.eup %2375  ;;  %v3241_v20 = vld [vmem:[%s3575_s5 + $0x70] sm:$0xff] }
 0x683   :  { %2377 = vrcp.f32 %v1028_v22  ;;  %v3248_v22 = vld [vmem:[%s3575_s5 + $0x68] sm:$0xff] }
 0x68d   :  { %v1121_v26 = vpop.f32.mrf.mxu1 }
 0x68e   :  { %v1126_v27 = vadd.f32 %v1121_v26, %v2929_v23  ;;  %v3254_v26 = vld [vmem:[%s3575_s5 + $0x60] sm:$0xff] }
 0x68f   :  { %v1123_v25 = vpop.f32.mrf.mxu1 }
 0x690   :  { %v2378_v29 = vpop.eup %2377  ;;  %v2202_v30 = vmul.f32 -1.442695, %v1126_v27  ;;  %v1127_v33 = vadd.f32 %v1123_v25, %v2931_v9  ;;  %v3260_v27 = vld [vmem:[%s3575_s5 + $0x58] sm:$0xff] }
 0x691   :  { %v1039_v32 = vmul.f32 %v2378_v29, %v2376_v28  ;;  %v1038_v56 = vmul.f32 %v2378_v29, %v3062_v60 }
 0x692   :  { %2379 = vpow2.f32 %v2202_v30  ;;  %v2203_v9 = vmul.f32 -1.442695, %v1127_v33 }
 0x693   :  { %1041 = vrot.lane.b32.xlu0 %v1039_v32, %s2527_s6  ;;  %2381 = vtanh.f32 %v1127_v33  ;;  %v3602_v33 = vld [vmem:[#allocation18_spill] sm:$0xff] }
 0x69f   :  { %v2380_v34 = vpop.eup %2379 }
 0x6a0   :  { %v1131_v35 = vadd.f32 1.0, %v2380_v34  ;;  %v2382_v36 = vpop.eup %2381 }
 0x6a2   :  { %2383 = vrcp.f32 %v1131_v35 }
 0x6a3   :  { %2385 = vpow2.f32 %v2200_v51 }
 0x6af   :  { %v2384_v37 = vpop.eup %2383 }
 0x6b0   :  { %v1142_v38 = vmul.f32 %v2384_v37, %v2382_v36  ;;  %v2386_v63 = vpop.eup %2385  ;;  %v1141_v17 = vmul.f32 %v2384_v37, %v3067_v4  ;;  %v3180_v4 = vld [vmem:[%s3573_s2 + $0x40] sm:$0xff] }
 0x6b1   :  { %v1035_v23 = vadd.f32 1.0, %v2386_v63 }
 0x6b2   :  { %1144 = vrot.lane.b32.xlu1 %v1142_v38, %s2527_s6 }
 0x6b3   :  { %2387 = vrcp.f32 %v1035_v23 }
 0x6c0   :  { %v2388_v62 = vpop.eup %2387 }
 0x705   :  { %v1042_v1 = vpop.permute.xlu0 %1041 }
 0x706   :  { %v3122_v59 = vadd.f32 %v1042_v1, %v1038_v56 }
 0x708   :  { %2389 = vtanh.f32 %v3122_v59 }
 0x709   :  { %2391 = vpow2.f32 %v2203_v9 }
 0x715   :  { %v2390_v19 = vpop.eup %2389 }
 0x716   :  { %v1046_v7 = vmul.f32 %v2390_v19, %v2388_v62  ;;  %v2392_v5 = vpop.eup %2391 }
 0x717   :  { %v1138_v55 = vadd.f32 1.0, %v2392_v5 }
 0x718   :  { %1151 = vrot.lane.b32.xlu0 %v1046_v7, %s2527_s6 }
 0x719   :  { %2393 = vrcp.f32 %v1138_v55 }
 0x724   :  { %v1145_v21 = vpop.permute.xlu1 %1144 }
 0x725   :  { %v3127_v57 = vadd.f32 %v1145_v21, %v1141_v17 }
 0x726   :  { %v2394_v2 = vpop.eup %2393 }
 0x727   :  { %2395 = vtanh.f32 %v3127_v57 }
 0x734   :  { %v2396_v60 = vpop.eup %2395 }
 0x735   :  { %v1149_v6 = vmul.f32 %v2396_v60, %v2394_v2 }
 0x737   :  { %1262 = vrot.lane.b32.xlu1 %v1149_v6, %s2527_s6  ;;  %2205 = vst.msk [vmem:[%s3578_s10 + $0x20] sm:$0xff] %vm523_vm1, %v1149_v6 }
 0x78a   :  { %v1152_v16 = vpop.permute.xlu0 %1151 }
 0x78b   :  { %2204 = vst.msk [vmem:[%s3578_s10 + $0x18] sm:$0xff] %vm320_vm2, %v1152_v16  ;;  %2206 = vmatmul.mubr.msk.f32.vlgmr.msra.gmra.mxu0 %vm320_vm2, %v1152_v16 }
 0x78c   :  { %1389 = vmatpush1.msra.mxu0 %v3143_v54  ;;  %1436 = vmatprep.mubr.f32.mxu0 %v3599_v3 }
 0x78d   :  { %1390 = vmatprep.subr.mxu0 %v3150_v31 }
 0x78e   :  { %1391 = vmatpush1.msra.mxu0 %v3156_v50 }
 0x78f   :  { %1392 = vmatprep.subr.mxu0 %v3162_v53 }
 0x790   :  { %1393 = vmatpush1.msra.mxu0 %v3168_v61 }
 0x791   :  { %1394 = vmatprep.subr.mxu0 %v3174_v24 }
 0x792   :  { %1395 = vmatpush1.msra.mxu0 %v3180_v4 }
 0x793   :  { %1396 = vmatprep.subr.mxu0 %v3186_v0 }
 0x794   :  { %1397 = vmatpush1.msra.mxu0 %v3192_v52 }
 0x795   :  { %1398 = vmatprep.subr.mxu0 %v3198_v18 }
 0x796   :  { %1399 = vmatpush1.msra.mxu0 %v3204_v15 }
 0x797   :  { %1400 = vmatprep.subr.mxu0 %v3210_v10 }
 0x798   :  { %1401 = vmatpush1.msra.mxu0 %v3216_v8 }
 0x799   :  { %1402 = vmatprep.subr.mxu0 %v3222_v11 }
 0x79a   :  { %1403 = vmatpush1.msra.mxu0 %v3228_v12 }
 0x79b   :  { %1597 = vmatprep.subr.mxu0 %v3234_v13 }
 0x7a9   :  { %v1263_v14 = vpop.permute.xlu1 %1262 }
 0x7aa   :  { %2209 = vmatmul.mubr.msk.f32.vlgmr.msra.gmra.mxu1 %vm320_vm2, %v1263_v14 }
 0x7ab   :  { %1492 = vmatpush1.msra.mxu1 %v3241_v20  ;;  %1539 = vmatprep.mubr.f32.mxu1 %v3599_v3 }
 0x7ac   :  { %1493 = vmatprep.subr.mxu1 %v3248_v22 }
 0x7ad   :  { %1494 = vmatpush1.msra.mxu1 %v3254_v26 }
 0x7ae   :  { %1495 = vmatprep.subr.mxu1 %v3260_v27 }
 0x7af   :  { %1496 = vmatpush1.msra.mxu1 %v2770_v39  ;;  %v3277_v39 = vld [vmem:[%s3575_s5 + $0x78] sm:$0xff] }
 0x7b0   :  { %1497 = vmatprep.subr.mxu1 %v2777_v40 }
 0x7b1   :  { %1498 = vmatpush1.msra.mxu1 %v2786_v41 }
 0x7b2   :  { %1499 = vmatprep.subr.mxu1 %v2793_v42 }
 0x7b3   :  { %1500 = vmatpush1.msra.mxu1 %v2800_v43 }
 0x7b4   :  { %1501 = vmatprep.subr.mxu1 %v2808_v44  ;;  %v3600_v44 = vld [vmem:[#allocation4_spill] sm:$0xff] }
 0x7b5   :  { %1502 = vmatpush1.msra.mxu1 %v2814_v45 }
 0x7b6   :  { %1503 = vmatprep.subr.mxu1 %v2821_v46 }
 0x7b7   :  { %1504 = vmatpush1.msra.mxu1 %v2828_v47 }
 0x7b8   :  { %1505 = vmatprep.subr.mxu1 %v2835_v48 }
 0x7b9   :  { %1506 = vmatpush1.msra.mxu1 %v2842_v49  ;;  %v3601_v49 = vld [vmem:[#allocation17_spill] sm:$0xff] }
 0x7ba   :  { %1700 = vmatprep.subr.mxu1 %v3277_v39 }
 0x84b   :  { %v1229_v40 = vpop.f32.mrf.mxu0 }
 0x84c   :  { %v1234_v41 = vadd.f32 %v1229_v40, %v2882_v58 }
 0x84d   :  { %v1231_v43 = vpop.f32.mrf.mxu0 }
 0x84e   :  { %v2207_v42 = vmul.f32 -1.442695, %v1234_v41  ;;  %v1235_v45 = vadd.f32 %v1231_v43, %v3600_v44  ;;  %v3331_v41 = vld [vmem:[%s3575_s5 + $0x50] sm:$0xff]  ;;  %v3349_v43 = vld [vmem:[%s3575_s5 + $0x38] sm:$0xff] }
 0x84f   :  { %v3355_v44 = vld [vmem:[%s3575_s5 + $0x30] sm:$0xff] }
 0x850   :  { %2397 = vpow2.f32 %v2207_v42  ;;  %v2208_v63 = vmul.f32 -1.442695, %v1235_v45  ;;  %v3343_v42 = vld [vmem:[%s3575_s5 + $0x40] sm:$0xff] }
 0x851   :  { %2399 = vtanh.f32 %v1235_v45  ;;  %v3361_v45 = vld [vmem:[%s3575_s5 + $0x28] sm:$0xff] }
 0x85d   :  { %v2398_v46 = vpop.eup %2397 }
 0x85e   :  { %v1239_v47 = vadd.f32 1.0, %v2398_v46  ;;  %v2400_v29 = vpop.eup %2399  ;;  %v3367_v46 = vld [vmem:[%s3575_s5 + $0x20] sm:$0xff] }
 0x860   :  { %2401 = vrcp.f32 %v1239_v47  ;;  %v3373_v47 = vld [vmem:[%s3575_s5 + $0x18] sm:$0xff] }
 0x86a   :  { %v1332_v48 = vpop.f32.mrf.mxu1 }
 0x86b   :  { %v1337_v28 = vadd.f32 %v1332_v48, %v3601_v49  ;;  %v3379_v48 = vld [vmem:[%s3575_s5 + $0x10] sm:$0xff]  ;;  %v3385_v49 = vld [vmem:[%s3575_s5 + $0x8] sm:$0xff] }
 0x86c   :  { %v1334_v58 = vpop.f32.mrf.mxu1 }
 0x86d   :  { %v2402_v30 = vpop.eup %2401  ;;  %v2210_v32 = vmul.f32 -1.442695, %v1337_v28  ;;  %v1338_v34 = vadd.f32 %v1334_v58, %v3602_v33  ;;  %v3391_v28 = vld [vmem:[%s3575_s5] sm:$0xff]  ;;  %v3604_v33 = vld [vmem:[#allocation6_spill] sm:$0xff] }
 0x86e   :  { %v1250_v25 = vmul.f32 %v2402_v30, %v2400_v29  ;;  %v1249_v1 = vmul.f32 %v2402_v30, %v3122_v59  ;;  %v3603_v30 = vld [vmem:[#allocation5_spill] sm:$0xff] }
 0x86f   :  { %2403 = vpow2.f32 %v2210_v32  ;;  %v2211_v19 = vmul.f32 -1.442695, %v1338_v34 }
 0x870   :  { %1252 = vrot.lane.b32.xlu0 %v1250_v25, %s2527_s6  ;;  %2405 = vtanh.f32 %v1338_v34 }
 0x87c   :  { %v2404_v35 = vpop.eup %2403 }
 0x87d   :  { %v1342_v36 = vadd.f32 1.0, %v2404_v35  ;;  %v2406_v37 = vpop.eup %2405 }
 0x87f   :  { %2407 = vrcp.f32 %v1342_v36 }
 0x880   :  { %2409 = vpow2.f32 %v2208_v63 }
 0x88c   :  { %v2408_v38 = vpop.eup %2407 }
 0x88d   :  { %v1353_v51 = vmul.f32 %v2408_v38, %v2406_v37  ;;  %v2410_v23 = vpop.eup %2409  ;;  %v1352_v2 = vmul.f32 %v2408_v38, %v3127_v57  ;;  %v3605_v38 = vld [vmem:[#allocation15_spill] sm:$0xff] }
 0x88e   :  { %v1246_v56 = vadd.f32 1.0, %v2410_v23 }
 0x88f   :  { %1355 = vrot.lane.b32.xlu1 %v1353_v51, %s2527_s6 }
 0x890   :  { %2411 = vrcp.f32 %v1246_v56 }
 0x89d   :  { %v2412_v7 = vpop.eup %2411 }
 0x8e2   :  { %v1253_v9 = vpop.permute.xlu0 %1252 }
 0x8e3   :  { %v3287_v62 = vadd.f32 %v1253_v9, %v1249_v1  ;;  %v3606_v9 = vld [vmem:[#allocation16_spill] sm:$0xff] }
 0x8e5   :  { %2413 = vtanh.f32 %v3287_v62 }
 0x8e6   :  { %2415 = vpow2.f32 %v2211_v19 }
 0x8f2   :  { %v2414_v5 = vpop.eup %2413 }
 0x8f3   :  { %v1257_v55 = vmul.f32 %v2414_v5, %v2412_v7  ;;  %v2416_v17 = vpop.eup %2415 }
 0x8f4   :  { %v1349_v21 = vadd.f32 1.0, %v2416_v17 }
 0x8f5   :  { %1362 = vrot.lane.b32.xlu0 %v1257_v55, %s2527_s6 }
 0x8f6   :  { %2417 = vrcp.f32 %v1349_v21 }
 0x901   :  { %v1356_v60 = vpop.permute.xlu1 %1355 }
 0x902   :  { %v3292_v6 = vadd.f32 %v1356_v60, %v1352_v2 }
 0x903   :  { %v2418_v59 = vpop.eup %2417 }
 0x904   :  { %2419 = vtanh.f32 %v3292_v6 }
 0x911   :  { %v2420_v16 = vpop.eup %2419 }
 0x912   :  { %v1360_v14 = vmul.f32 %v2420_v16, %v2418_v59 }
 0x914   :  { %1471 = vrot.lane.b32.xlu1 %v1360_v14, %s2527_s6  ;;  %2213 = vst.msk [vmem:[%s3578_s10 + $0x18] sm:$0xff] %vm523_vm1, %v1360_v14 }
 0x967   :  { %v1363_v40 = vpop.permute.xlu0 %1362 }
 0x968   :  { %2212 = vst.msk [vmem:[%s3578_s10 + $0x20] sm:$0xff] %vm320_vm2, %v1363_v40  ;;  %2214 = vmatmul.mubr.msk.f32.vlgmr.msra.gmra.mxu0 %vm320_vm2, %v1363_v40 }
 0x969   :  { %1598 = vmatpush1.msra.mxu0 %v3143_v54  ;;  %1645 = vmatprep.mubr.f32.mxu0 %v3599_v3 }
 0x96a   :  { %1599 = vmatprep.subr.mxu0 %v3150_v31 }
 0x96b   :  { %1600 = vmatpush1.msra.mxu0 %v3156_v50 }
 0x96c   :  { %1601 = vmatprep.subr.mxu0 %v3162_v53 }
 0x96d   :  { %1602 = vmatpush1.msra.mxu0 %v3168_v61 }
 0x96e   :  { %1603 = vmatprep.subr.mxu0 %v3174_v24 }
 0x96f   :  { %1604 = vmatpush1.msra.mxu0 %v3180_v4 }
 0x970   :  { %1605 = vmatprep.subr.mxu0 %v3186_v0 }
 0x971   :  { %1606 = vmatpush1.msra.mxu0 %v3192_v52 }
 0x972   :  { %1607 = vmatprep.subr.mxu0 %v3198_v18 }
 0x973   :  { %1608 = vmatpush1.msra.mxu0 %v3204_v15 }
 0x974   :  { %1609 = vmatprep.subr.mxu0 %v3210_v10 }
 0x975   :  { %1610 = vmatpush1.msra.mxu0 %v3216_v8 }
 0x976   :  { %1611 = vmatprep.subr.mxu0 %v3222_v11 }
 0x977   :  { %1612 = vmatpush1.msra.mxu0 %v3228_v12 }
 0x978   :  { %1806 = vmatprep.subr.mxu0 %v3234_v13  ;;  %v3337_v13 = vld [vmem:[%s3575_s5 + $0x48] sm:$0xff] }
 0x986   :  { %v1472_v57 = vpop.permute.xlu1 %1471 }
 0x987   :  { %2217 = vmatmul.mubr.msk.f32.vlgmr.msra.gmra.mxu1 %vm320_vm2, %v1472_v57 }
 0x988   :  { %1701 = vmatpush1.msra.mxu1 %v3241_v20  ;;  %1748 = vmatprep.mubr.f32.mxu1 %v3599_v3 }
 0x989   :  { %1702 = vmatprep.subr.mxu1 %v3248_v22 }
 0x98a   :  { %1703 = vmatpush1.msra.mxu1 %v3254_v26 }
 0x98b   :  { %1704 = vmatprep.subr.mxu1 %v3260_v27 }
 0x98c   :  { %1705 = vmatpush1.msra.mxu1 %v3331_v41 }
 0x98d   :  { %1706 = vmatprep.subr.mxu1 %v3337_v13 }
 0x98e   :  { %1707 = vmatpush1.msra.mxu1 %v3343_v42 }
 0x98f   :  { %1708 = vmatprep.subr.mxu1 %v3349_v43 }
 0x990   :  { %1709 = vmatpush1.msra.mxu1 %v3355_v44 }
 0x991   :  { %1710 = vmatprep.subr.mxu1 %v3361_v45 }
 0x992   :  { %1711 = vmatpush1.msra.mxu1 %v3367_v46 }
 0x993   :  { %1712 = vmatprep.subr.mxu1 %v3373_v47 }
 0x994   :  { %1713 = vmatpush1.msra.mxu1 %v3379_v48 }
 0x995   :  { %1714 = vmatprep.subr.mxu1 %v3385_v49 }
 0x996   :  { %1715 = vmatpush1.msra.mxu1 %v3391_v28 }
 0x997   :  { %1908 = vmatprep.subr.mxu1 %v3277_v39 }
 0xa28   :  { %v1438_v29 = vpop.f32.mrf.mxu0 }
 0xa29   :  { %v1443_v32 = vadd.f32 %v1438_v29, %v3603_v30 }
 0xa2a   :  { %v1440_v58 = vpop.f32.mrf.mxu0 }
 0xa2b   :  { %v2215_v25 = vmul.f32 -1.442695, %v1443_v32  ;;  %v1444_v34 = vadd.f32 %v1440_v58, %v3604_v33 }
 0xa2d   :  { %2421 = vpow2.f32 %v2215_v25  ;;  %v2216_v2 = vmul.f32 -1.442695, %v1444_v34 }
 0xa2e   :  { %2423 = vtanh.f32 %v1444_v34 }
 0xa3a   :  { %v2422_v35 = vpop.eup %2421 }
 0xa3b   :  { %v1448_v36 = vadd.f32 1.0, %v2422_v35  ;;  %v2424_v63 = vpop.eup %2423 }
 0xa3d   :  { %2425 = vrcp.f32 %v1448_v36 }
 0xa47   :  { %v1541_v37 = vpop.f32.mrf.mxu1 }
 0xa48   :  { %v1546_v51 = vadd.f32 %v1541_v37, %v3605_v38 }
 0xa49   :  { %v1543_v39 = vpop.f32.mrf.mxu1 }
 0xa4a   :  { %v2426_v23 = vpop.eup %2425  ;;  %v2218_v56 = vmul.f32 -1.442695, %v1546_v51  ;;  %v1547_v19 = vadd.f32 %v1543_v39, %v3606_v9 }
 0xa4b   :  { %v1459_v1 = vmul.f32 %v2426_v23, %v2424_v63  ;;  %v1458_v16 = vmul.f32 %v2426_v23, %v3287_v62 }
 0xa4c   :  { %2427 = vpow2.f32 %v2218_v56  ;;  %v2219_v57 = vmul.f32 -1.442695, %v1547_v19 }
 0xa4d   :  { %1461 = vrot.lane.b32.xlu0 %v1459_v1, %s2527_s6  ;;  %2429 = vtanh.f32 %v1547_v19 }
 0xa59   :  { %v2428_v7 = vpop.eup %2427 }
 0xa5a   :  { %v1551_v5 = vadd.f32 1.0, %v2428_v7  ;;  %v2430_v55 = vpop.eup %2429 }
 0xa5c   :  { %2431 = vrcp.f32 %v1551_v5 }
 0xa5d   :  { %2433 = vpow2.f32 %v2216_v2 }
 0xa69   :  { %v2432_v17 = vpop.eup %2431 }
 0xa6a   :  { %v1562_v21 = vmul.f32 %v2432_v17, %v2430_v55  ;;  %v2434_v60 = vpop.eup %2433  ;;  %v1561_v33 = vmul.f32 %v2432_v17, %v3292_v6 }
 0xa6b   :  { %v1455_v59 = vadd.f32 1.0, %v2434_v60  ;;  %v3611_v60 = vld [vmem:[#allocation9_spill] sm:$0xff] }
 0xa6c   :  { %1564 = vrot.lane.b32.xlu1 %v1562_v21, %s2527_s6 }
 0xa6d   :  { %2435 = vrcp.f32 %v1455_v59 }
 0xa7a   :  { %v2436_v29 = vpop.eup %2435 }
 0xabf   :  { %v1462_v14 = vpop.permute.xlu0 %1461 }
 0xac0   :  { %v3402_v40 = vadd.f32 %v1462_v14, %v1458_v16 }
 0xac2   :  { %2437 = vtanh.f32 %v3402_v40 }
 0xac3   :  { %2439 = vpow2.f32 %v2219_v57 }
 0xacf   :  { %v2438_v30 = vpop.eup %2437 }
 0xad0   :  { %v1466_v32 = vmul.f32 %v2438_v30, %v2436_v29  ;;  %v2440_v25 = vpop.eup %2439 }
 0xad1   :  { %v1558_v58 = vadd.f32 1.0, %v2440_v25  ;;  %v3613_v25 = vld [vmem:[#allocation11_spill] sm:$0xff] }
 0xad2   :  { %1571 = vrot.lane.b32.xlu0 %v1466_v32, %s2527_s6 }
 0xad3   :  { %2441 = vrcp.f32 %v1558_v58 }
 0xade   :  { %v1565_v34 = vpop.permute.xlu1 %1564 }
 0xadf   :  { %v3407_v35 = vadd.f32 %v1565_v34, %v1561_v33 }
 0xae0   :  { %v2442_v62 = vpop.eup %2441 }
 0xae1   :  { %2443 = vtanh.f32 %v3407_v35 }
 0xaee   :  { %v2444_v36 = vpop.eup %2443 }
 0xaef   :  { %v1569_v37 = vmul.f32 %v2444_v36, %v2442_v62  ;;  %v2293_v36 = vld [vmem:[%s3579_s7 + $0x38] sm:$0xff]  }
 0xaf1   :  { %1680 = vrot.lane.b32.xlu1 %v1569_v37, %s2527_s6  ;;  %2221 = vst.msk [vmem:[%s3578_s10 + $0x10] sm:$0xff] %vm523_vm1, %v1569_v37 }
 0xb44   :  { %v1572_v38 = vpop.permute.xlu0 %1571 }
 0xb45   :  { %2220 = vst.msk [vmem:[%s3578_s10 + $0x28] sm:$0xff] %vm320_vm2, %v1572_v38  ;;  %2222 = vmatmul.mubr.msk.f32.vlgmr.msra.gmra.mxu0 %vm320_vm2, %v1572_v38  ;;  %v3614_v38 = vld [vmem:[#allocation12_spill] sm:$0xff] }
 0xb46   :  { %1807 = vmatpush1.msra.mxu0 %v3143_v54  ;;  %1854 = vmatprep.mubr.f32.mxu0 %v3599_v3 }
 0xb47   :  { %1808 = vmatprep.subr.mxu0 %v3150_v31  ;;  %v3607_v31 = vld [vmem:[#allocation7_spill] sm:$0xff] }
 0xb48   :  { %1809 = vmatpush1.msra.mxu0 %v3156_v50 }
 0xb49   :  { %1810 = vmatprep.subr.mxu0 %v3162_v53 }
 0xb4a   :  { %1811 = vmatpush1.msra.mxu0 %v3168_v61 }
 0xb4b   :  { %1812 = vmatprep.subr.mxu0 %v3174_v24  ;;  %v3608_v24 = vld [vmem:[#allocation8_spill] sm:$0xff] }
 0xb4c   :  { %1813 = vmatpush1.msra.mxu0 %v3180_v4 }
 0xb4d   :  { %1814 = vmatprep.subr.mxu0 %v3186_v0 }
 0xb4e   :  { %1815 = vmatpush1.msra.mxu0 %v3192_v52 }
 0xb4f   :  { %1816 = vmatprep.subr.mxu0 %v3198_v18 }
 0xb50   :  { %1817 = vmatpush1.msra.mxu0 %v3204_v15  ;;  %v3609_v15 = vld [vmem:[#allocation13_spill] sm:$0xff] }
 0xb51   :  { %1818 = vmatprep.subr.mxu0 %v3210_v10 }
 0xb52   :  { %1819 = vmatpush1.msra.mxu0 %v3216_v8 }
 0xb53   :  { %1820 = vmatprep.subr.mxu0 %v3222_v11 }
 0xb54   :  { %1821 = vmatpush1.msra.mxu0 %v3228_v12 }
 0xb55   :  { %2258 = vmatprep.subr.bf16.mxu0 %v2293_v36 }
 0xb63   :  { %v1681_v54 = vpop.permute.xlu1 %1680 }
 0xb64   :  { %2225 = vmatmul.mubr.msk.f32.vlgmr.msra.gmra.mxu1 %vm320_vm2, %v1681_v54 }
 0xb65   :  { %1909 = vmatpush1.msra.mxu1 %v3241_v20  ;;  %1956 = vmatprep.mubr.f32.mxu1 %v3599_v3 }
 0xb66   :  { %1910 = vmatprep.subr.mxu1 %v3248_v22 }
 0xb67   :  { %1911 = vmatpush1.msra.mxu1 %v3254_v26  ;;  %v3610_v26 = vld [vmem:[#allocation14_spill] sm:$0xff] }
 0xb68   :  { %1912 = vmatprep.subr.mxu1 %v3260_v27 }
 0xb69   :  { %1913 = vmatpush1.msra.mxu1 %v3331_v41 }
 0xb6a   :  { %1914 = vmatprep.subr.mxu1 %v3337_v13 }
 0xb6b   :  { %1915 = vmatpush1.msra.mxu1 %v3343_v42 }
 0xb6c   :  { %1916 = vmatprep.subr.mxu1 %v3349_v43 }
 0xb6d   :  { %1917 = vmatpush1.msra.mxu1 %v3355_v44 }
 0xb6e   :  { %1918 = vmatprep.subr.mxu1 %v3361_v45 }
 0xb6f   :  { %1919 = vmatpush1.msra.mxu1 %v3367_v46 }
 0xb70   :  { %1920 = vmatprep.subr.mxu1 %v3373_v47 }
 0xb71   :  { %1921 = vmatpush1.msra.mxu1 %v3379_v48 }
 0xb72   :  { %1922 = vmatprep.subr.mxu1 %v3385_v49 }
 0xb73   :  { %1923 = vmatpush1.msra.mxu1 %v3391_v28 }
 0xc05   :  { %v1647_v3 = vpop.f32.mrf.mxu0 }
 0xc06   :  { %v1652_v50 = vadd.f32 %v1647_v3, %v3607_v31 }
 0xc07   :  { %v1649_v61 = vpop.f32.mrf.mxu0 }
 0xc08   :  { %v2223_v53 = vmul.f32 -1.442695, %v1652_v50  ;;  %v1653_v4 = vadd.f32 %v1649_v61, %v3608_v24  ;;  %v2294_v50 = vld [vmem:[%s3579_s7 + $0x30] sm:$0xff]   ;;  %v2296_v24 = vld [vmem:[%s3579_s7 + $0x20] sm:$0xff]  }
 0xc0a   :  { %2445 = vpow2.f32 %v2223_v53  ;;  %v2224_v44 = vmul.f32 -1.442695, %v1653_v4  ;;  %v2295_v53 = vld [vmem:[%s3579_s7 + $0x28] sm:$0xff]  }
 0xc0b   :  { %2447 = vtanh.f32 %v1653_v4 }
 0xc17   :  { %v2446_v0 = vpop.eup %2445 }
 0xc18   :  { %v1657_v52 = vadd.f32 1.0, %v2446_v0  ;;  %v2448_v8 = vpop.eup %2447 }
 0xc1a   :  { %2449 = vrcp.f32 %v1657_v52  ;;  %v2297_v52 = vld [vmem:[%s3579_s7 + $0x18] sm:$0xff]  }
 0xc24   :  { %v1750_v18 = vpop.f32.mrf.mxu1 }
 0xc25   :  { %v1755_v10 = vadd.f32 %v1750_v18, %v3609_v15  ;;  %v2298_v18 = vld [vmem:[%s3579_s7 + $0x10] sm:$0xff]   ;;  %v2299_v15 = vld [vmem:[%s3579_s7 + $0x8] sm:$0xff]  }
 0xc26   :  { %v1752_v22 = vpop.f32.mrf.mxu1 }
 0xc27   :  { %v2450_v11 = vpop.eup %2449  ;;  %v2226_v12 = vmul.f32 -1.442695, %v1755_v10  ;;  %v1756_v27 = vadd.f32 %v1752_v22, %v3610_v26  ;;  %v2300_v10 = vld [vmem:[%s3579_s7] sm:$0xff]  }
 0xc28   :  { %v1668_v20 = vmul.f32 %v2450_v11, %v2448_v8  ;;  %v1667_v47 = vmul.f32 %v2450_v11, %v3402_v40  ;;  %v3612_v40 = vld [vmem:[#allocation10_spill] sm:$0xff] }
 0xc29   :  { %2451 = vpow2.f32 %v2226_v12  ;;  %v2227_v28 = vmul.f32 -1.442695, %v1756_v27 }
 0xc2a   :  { %1670 = vrot.lane.b32.xlu0 %v1668_v20, %s2527_s6  ;;  %2453 = vtanh.f32 %v1756_v27 }
 0xc36   :  { %v2452_v6 = vpop.eup %2451 }
 0xc37   :  { %v1760_v41 = vadd.f32 1.0, %v2452_v6  ;;  %v2454_v13 = vpop.eup %2453 }
 0xc39   :  { %2455 = vrcp.f32 %v1760_v41 }
 0xc3a   :  { %2457 = vpow2.f32 %v2224_v44 }
 0xc46   :  { %v2456_v42 = vpop.eup %2455 }
 0xc47   :  { %v1771_v43 = vmul.f32 %v2456_v42, %v2454_v13  ;;  %v2458_v45 = vpop.eup %2457  ;;  %v1770_v39 = vmul.f32 %v2456_v42, %v3407_v35 }
 0xc48   :  { %v1664_v46 = vadd.f32 1.0, %v2458_v45 }
 0xc49   :  { %1773 = vrot.lane.b32.xlu1 %v1771_v43, %s2527_s6 }
 0xc4a   :  { %2459 = vrcp.f32 %v1664_v46 }
 0xc57   :  { %v2460_v51 = vpop.eup %2459 }
 0xc9c   :  { %v1671_v48 = vpop.permute.xlu0 %1670 }
 0xc9d   :  { %v3460_v49 = vadd.f32 %v1671_v48, %v1667_v47 }
 0xc9f   :  { %2461 = vtanh.f32 %v3460_v49 }
 0xca0   :  { %2463 = vpow2.f32 %v2227_v28  ;;  %v1995_v28 = vld [vmem:[%s3578_s10 + $0x10] sm:$0xff] }
 0xcac   :  { %v2462_v63 = vpop.eup %2461 }
 0xcad   :  { %v1675_v23 = vmul.f32 %v2462_v63, %v2460_v51  ;;  %v2464_v56 = vpop.eup %2463 }
 0xcae   :  { %v1767_v1 = vadd.f32 1.0, %v2464_v56 }
 0xcaf   :  { %1780 = vrot.lane.b32.xlu0 %v1675_v23, %s2527_s6  ;;  %v1998_v23 = vld [vmem:[%s3578_s10 + $0x28] sm:$0xff] }
 0xcb0   :  { %2465 = vrcp.f32 %v1767_v1  ;;  %v1996_v1 = vld [vmem:[%s3578_s10 + $0x18] sm:$0xff] }
 0xcbb   :  { %v1774_v9 = vpop.permute.xlu1 %1773 }
 0xcbc   :  { %v3465_v19 = vadd.f32 %v1774_v9, %v1770_v39  ;;  %v2002_v39 = vpack.c.bf16 %v1996_v1, %v1995_v28  ;;  %v1997_v9 = vld [vmem:[%s3578_s10 + $0x20] sm:$0xff] }
 0xcbd   :  { %v2466_v7 = vpop.eup %2465 }
 0xcbe   :  { %2467 = vtanh.f32 %v3465_v19 }
 0xccb   :  { %v2468_v5 = vpop.eup %2467 }
 0xccc   :  { %v1778_v55 = vmul.f32 %v2468_v5, %v2466_v7 }
 0xcce   :  { %1888 = vrot.lane.b32.xlu1 %v1778_v55, %s2527_s6  ;;  %2229 = vst.msk [vmem:[%s3578_s10 + $0x8] sm:$0xff] %vm523_vm1, %v1778_v55 }
 0xcd5   :  { %v1994_v63 = vld [vmem:[%s3578_s10 + $0x8] sm:$0xff] }
 0xd21   :  { %v1781_v17 = vpop.permute.xlu0 %1780 }
 0xd22   :  { %2228 = vst.msk [vmem:[%s3578_s10 + $0x30] sm:$0xff] %vm320_vm2, %v1781_v17  ;;  %2230 = vmatmul.mubr.msk.f32.vlgmr.msra.gmra.mxu0 %vm320_vm2, %v1781_v17 }
 0xd23   :  { %2259 = vmatpush3.bf16.msra.mxu0 %v2293_v36 }
 0xd24   :  { %2260 = vmatprep.subr.bf16.mxu0 %v2294_v50 }
 0xd27   :  { %2261 = vmatpush3.bf16.msra.mxu0 %v2294_v50 }
 0xd28   :  { %2262 = vmatprep.subr.bf16.mxu0 %v2295_v53 }
 0xd29   :  { %v1999_v5 = vld [vmem:[%s3578_s10 + $0x30] sm:$0xff] }
 0xd2b   :  { %2263 = vmatpush3.bf16.msra.mxu0 %v2295_v53 }
 0xd2c   :  { %2264 = vmatprep.subr.bf16.mxu0 %v2296_v24 }
 0xd2f   :  { %2265 = vmatpush3.bf16.msra.mxu0 %v2296_v24 }
 0xd30   :  { %2266 = vmatprep.subr.bf16.mxu0 %v2297_v52 }
 0xd33   :  { %2267 = vmatpush3.bf16.msra.mxu0 %v2297_v52 }
 0xd34   :  { %2268 = vmatprep.subr.bf16.mxu0 %v2298_v18 }
 0xd37   :  { %2269 = vmatpush3.bf16.msra.mxu0 %v2298_v18 }
 0xd38   :  { %2270 = vmatprep.subr.bf16.mxu0 %v2299_v15 }
 0xd3b   :  { %2271 = vmatpush3.bf16.msra.mxu0 %v2299_v15 }
 0xd3c   :  { %2272 = vmatprep.subr.bf16.mxu0 %v2300_v10 }
 0xd3f   :  { %2273 = vmatpush3.bf16.msra.mxu0 %v2300_v10 }
 0xd40   :  { %v1889_v21 = vpop.permute.xlu1 %1888 }
 0xd41   :  { %2233 = vmatmul.mubr.msk.f32.vlgmr.msra.gmra.mxu1 %vm320_vm2, %v1889_v21  ;;  %v2245_v21 = vld [vmem:[%s3580_s8] ss:$0 sm:$0xff] }
 0xde2   :  { %v1856_v2 = vpop.f32.mrf.mxu0 }
 0xde3   :  { %v1861_v59 = vadd.f32 %v1856_v2, %v3611_v60 }
 0xde4   :  { %v1858_v14 = vpop.f32.mrf.mxu0 }
 0xde5   :  { %v2231_v16 = vmul.f32 -1.442695, %v1861_v59  ;;  %v1862_v57 = vadd.f32 %v1858_v14, %v3612_v40 }
 0xde7   :  { %2469 = vpow2.f32 %v2231_v16  ;;  %v2232_v8 = vmul.f32 -1.442695, %v1862_v57 }
 0xde8   :  { %2471 = vtanh.f32 %v1862_v57 }
 0xdf4   :  { %v2470_v29 = vpop.eup %2469 }
 0xdf5   :  { %v1866_v30 = vadd.f32 1.0, %v2470_v29  ;;  %v2472_v33 = vpop.eup %2471 }
 0xdf7   :  { %2473 = vrcp.f32 %v1866_v30 }
 0xe01   :  { %v1958_v32 = vpop.f32.mrf.mxu1 }
 0xe02   :  { %v1963_v58 = vadd.f32 %v1958_v32, %v3613_v25 }
 0xe03   :  { %v1960_v37 = vpop.f32.mrf.mxu1 }
 0xe04   :  { %v2474_v34 = vpop.eup %2473  ;;  %v2234_v35 = vmul.f32 -1.442695, %v1963_v58  ;;  %v1964_v54 = vadd.f32 %v1960_v37, %v3614_v38 }
 0xe05   :  { %v1877_v62 = vmul.f32 %v2474_v34, %v2472_v33  ;;  %v1876_v20 = vmul.f32 %v2474_v34, %v3460_v49 }
 0xe06   :  { %2475 = vpow2.f32 %v2234_v35  ;;  %v2235_v27 = vmul.f32 -1.442695, %v1964_v54 }
 0xe07   :  { %1879 = vrot.lane.b32.xlu0 %v1877_v62, %s2527_s6  ;;  %2477 = vtanh.f32 %v1964_v54 }
 0xe13   :  { %v2476_v3 = vpop.eup %2475 }
 0xe14   :  { %v1968_v31 = vadd.f32 1.0, %v2476_v3  ;;  %v2478_v61 = vpop.eup %2477 }
 0xe16   :  { %2479 = vrcp.f32 %v1968_v31 }
 0xe17   :  { %2481 = vpow2.f32 %v2232_v8 }
 0xe23   :  { %v2480_v4 = vpop.eup %2479 }
 0xe24   :  { %v1979_v0 = vmul.f32 %v2480_v4, %v2478_v61  ;;  %v2482_v11 = vpop.eup %2481  ;;  %v1978_v44 = vmul.f32 %v2480_v4, %v3465_v19  ;;  %v2003_v19 = vpack.c.bf16 %v1998_v23, %v1997_v9 }
 0xe25   :  { %v1873_v12 = vadd.f32 1.0, %v2482_v11 }
 0xe26   :  { %1981 = vrot.lane.b32.xlu1 %v1979_v0, %s2527_s6 }
 0xe27   :  { %2483 = vrcp.f32 %v1873_v12 }
 0xe34   :  { %v2484_v6 = vpop.eup %2483 }
 0xe79   :  { %v1880_v22 = vpop.permute.xlu0 %1879 }
 0xe7a   :  { %v1882_v26 = vadd.f32 %v1880_v22, %v1876_v20 }
 0xe7c   :  { %2485 = vtanh.f32 %v1882_v26 }
 0xe7d   :  { %2487 = vpow2.f32 %v2235_v27 }
 0xe89   :  { %v2486_v41 = vpop.eup %2485 }
 0xe8a   :  { %v1884_v13 = vmul.f32 %v2486_v41, %v2484_v6  ;;  %v2488_v42 = vpop.eup %2487 }
 0xe8b   :  { %v1975_v43 = vadd.f32 1.0, %v2488_v42 }
 0xe8c   :  { %1988 = vrot.lane.b32.xlu0 %v1884_v13, %s2527_s6 }
 0xe8d   :  { %2489 = vrcp.f32 %v1975_v43 }
 0xe98   :  { %v1982_v45 = vpop.permute.xlu1 %1981 }
 0xe99   :  { %v1984_v46 = vadd.f32 %v1982_v45, %v1978_v44 }
 0xe9a   :  { %v2490_v47 = vpop.eup %2489 }
 0xe9b   :  { %2491 = vtanh.f32 %v1984_v46 }
 0xea8   :  { %v2492_v48 = vpop.eup %2491 }
 0xea9   :  { %v1986_v49 = vmul.f32 %v2492_v48, %v2490_v47 }
 0xeab   :  { %1992 = vst.msk [vmem:[%s3578_s10] sm:$0xff] %vm523_vm1, %v1986_v49 }
 0xeb2   :  { %v1993_v51 = vld [vmem:[%s3578_s10] sm:$0xff] }
 0xeb3   :  { %v2001_v56 = vpack.c.bf16 %v1994_v63, %v1993_v51 }
 0xeb5   :  { %2274 = vmatprep.mubr.bf16.mxu0 %v2001_v56 }
 0xeb6   :  { %2275 = vmatmul.mubr.bf16.vlgmr.msra.gmra.mxu0 %v2002_v39 }
 0xeb7   :  { %2278 = vmatprep.mubr.bf16.mxu0 %v2003_v19 }
 0xefe   :  { %v1989_v7 = vpop.permute.xlu0 %1988 }
 0xeff   :  { %2236 = vst.msk [vmem:[%s3578_s10 + $0x38] sm:$0xff] %vm320_vm2, %v1989_v7 }
 0xf06   :  { %v2000_v55 = vld [vmem:[%s3578_s10 + $0x38] sm:$0xff] }
 0xf07   :  { %v2004_v17 = vpack.c.bf16 %v2000_v55, %v1999_v5 }
 0xf09   :  { %2279 = vmatmul.mubr.bf16.gmra.mxu0 %v2004_v17 }
 0xf76   :  { %v2276_v2 = vpop.f32.mrf.mxu0 }
 0xf77   :  { %v2143_v60 = vadd.f32 %v2276_v2, %v2245_v21 }
 0xf78   :  { %v2103_v59 = vpop.f32.mrf.mxu0 }
 0xf79   :  { %2151 = vst [vmem:[%s3581_s9 + $0x10] sm:$0xff] %v2143_v60  ;;  %v2141_v16 = vadd.f32 %v2245_v21, %v2103_v59 }
 0xf7a   :  { %v2277_v14 = vpop.f32.mrf.mxu0 }
 0xf7b   :  { %2149 = vst [vmem:[%s3581_s9] sm:$0xff] %v2141_v16  ;;  %v2144_v40 = vadd.f32 %v2277_v14, %v2245_v21 }
 0xf7c   :  { %v2106_v57 = vpop.f32.mrf.mxu0 }
 0xf7d   :  { %2152 = vst [vmem:[%s3581_s9 + $0x18] sm:$0xff] %v2144_v40  ;;  %v2142_v29 = vadd.f32 %v2245_v21, %v2106_v57 }
 0xf7f   :  { %2150 = vst [vmem:[%s3581_s9 + $0x8] sm:$0xff] %v2142_v29 }
 0xfc9   :  { %v2280_v30 = vpop.f32.mrf.mxu0 }
 0xfca   :  { %v2147_v32 = vadd.f32 %v2280_v30, %v2245_v21 }
 0xfcb   :  { %v2119_v25 = vpop.f32.mrf.mxu0 }
 0xfcc   :  { %2155 = vst [vmem:[%s3581_s9 + $0x30] sm:$0xff] %v2147_v32  ;;  %v2145_v58 = vadd.f32 %v2245_v21, %v2119_v25 }
 0xfcd   :  { %v2281_v33 = vpop.f32.mrf.mxu0 }
 0xfce   :  { %2153 = vst [vmem:[%s3581_s9 + $0x20] sm:$0xff] %v2145_v58  ;;  %v2148_v34 = vadd.f32 %v2281_v33, %v2245_v21 }
 0xfcf   :  { %v2122_v35 = vpop.f32.mrf.mxu0 }
 0xfd0   :  { %2156 = vst [vmem:[%s3581_s9 + $0x38] sm:$0xff] %v2148_v34  ;;  %v2146_v62 = vadd.f32 %v2245_v21, %v2122_v35 }
 0xfd2   :  { %2154 = vst [vmem:[%s3581_s9 + $0x28] sm:$0xff] %v2146_v62 }

</bundles_post_ra>
